<compile_context>
chip_gen: v7x
topology: tpu7x:2x2x1
jax: 0.10.0
libtpu: 0.0.40
codegen_flags: <defaults>
</compile_context>

<pallas_src>
import functools
import math

import jax
import jax.numpy as jnp
import numpy as np
from jax import lax
from jax.experimental import pallas as pl
from jax.experimental.pallas import tpu as pltpu


# ---------------------------------------------------------------------------
# Kernel 1: fused projections + per-head content / raw position scores
# ---------------------------------------------------------------------------
def _proj_scores_kernel(q_ref, k_ref, v_ref, p_ref,
                        wq_ref, wk_ref, wv_ref, wp_ref,
                        bq_ref, bk_ref, bv_ref,
                        u_ref, vb_ref,
                        content_ref, pos_raw_ref, vproj_ref):
    H, Dh = u_ref.shape

    x_q = q_ref[0]   # (T, D)
    x_k = k_ref[0]
    x_v = v_ref[0]
    x_p = p_ref[0]

    # Linear projections (weights stored as (in, out), i.e. torch W^T).
    qp = jnp.dot(x_q, wq_ref[...], preferred_element_type=jnp.float32) + bq_ref[...]
    kp = jnp.dot(x_k, wk_ref[...], preferred_element_type=jnp.float32) + bk_ref[...]
    vp = jnp.dot(x_v, wv_ref[...], preferred_element_type=jnp.float32) + bv_ref[...]
    pp = jnp.dot(x_p, wp_ref[...], preferred_element_type=jnp.float32)  # no bias

    vproj_ref[0] = vp.astype(vproj_ref.dtype)

    # Contract the head dim of two (T, Dh) operands -> (T, T) without an
    # explicit transpose (MXU-friendly).
    dn = (((1,), (1,)), ((), ()))
    for h in range(H):
        sl = slice(h * Dh, (h + 1) * Dh)
        qh = qp[:, sl]
        kh = kp[:, sl]
        ph = pp[:, sl]
        u_h = u_ref[h:h + 1, :]    # (1, Dh)
        vb_h = vb_ref[h:h + 1, :]  # (1, Dh)
        content_ref[0, h] = lax.dot_general(
            qh + u_h, kh, dn, preferred_element_type=jnp.float32)
        pos_raw_ref[0, h] = lax.dot_general(
            qh + vb_h, ph, dn, preferred_element_type=jnp.float32)


def _proj_scores(query, key, value, pos_emb,
                 wq, wk, wv, wp, bq, bk, bv, u_bias, v_bias):
    B, T, D = query.shape
    H, Dh = u_bias.shape

    act_spec = pl.BlockSpec((1, T, D), lambda b: (b, 0, 0))
    w_spec = pl.BlockSpec((D, D), lambda b: (0, 0))
    b_spec = pl.BlockSpec((1, D), lambda b: (0, 0))
    hb_spec = pl.BlockSpec((H, Dh), lambda b: (0, 0))
    score_spec = pl.BlockSpec((1, H, T, T), lambda b: (b, 0, 0, 0))

    return pl.pallas_call(
        _proj_scores_kernel,
        out_shape=(
            jax.ShapeDtypeStruct((B, H, T, T), jnp.float32),  # content score
            jax.ShapeDtypeStruct((B, H, T, T), jnp.float32),  # pos score (unshifted)
            jax.ShapeDtypeStruct((B, T, D), jnp.float32),     # projected V
        ),
        grid_spec=pltpu.PrefetchScalarGridSpec(
            num_scalar_prefetch=0,
            grid=(B,),
            in_specs=[act_spec, act_spec, act_spec, act_spec,
                      w_spec, w_spec, w_spec, w_spec,
                      b_spec, b_spec, b_spec,
                      hb_spec, hb_spec],
            out_specs=[score_spec, score_spec, act_spec],
        ),
        compiler_params=pltpu.CompilerParams(
            dimension_semantics=("parallel",)),
    )(query, key, value, pos_emb, wq, wk, wv, wp, bq, bk, bv, u_bias, v_bias)


# ---------------------------------------------------------------------------
# Kernel 2: scale + mask + softmax + context + output projection
# ---------------------------------------------------------------------------
def _attend_kernel(content_ref, pos_shift_ref, mask_ref, vproj_ref,
                   wo_ref, bo_ref, out_ref, ctx_scratch):
    H = content_ref.shape[1]
    D = vproj_ref.shape[2]
    Dh = D // H
    inv_sqrt_dim = 1.0 / math.sqrt(D)   # d_model == D

    mask2d = mask_ref[0]                # (T, T), 1.0 where masked
    vp = vproj_ref[0]                   # (T, D)

    for h in range(H):
        score = (content_ref[0, h] + pos_shift_ref[0, h]) * inv_sqrt_dim
        score = jnp.where(mask2d > 0.0, jnp.float32(-1e9), score)
        # Numerically stable softmax over the key dimension.
        m = jnp.max(score, axis=-1, keepdims=True)
        e = jnp.exp(score - m)
        s = jnp.sum(e, axis=-1, keepdims=True)
        attn = e * pl.reciprocal(s, approx=True)
        # TODO(synk): training-mode attention dropout (p=dropout_p) not applied
        # (inference path; torch Dropout in eval() is identity).
        ctx_h = jnp.dot(attn, vp[:, h * Dh:(h + 1) * Dh],
                        preferred_element_type=jnp.float32)     # (T, Dh)
        ctx_scratch[:, h * Dh:(h + 1) * Dh] = ctx_h

    out = jnp.dot(ctx_scratch[...], wo_ref[...],
                  preferred_element_type=jnp.float32) + bo_ref[...]
    out_ref[0] = out.astype(out_ref.dtype)


def _attend(content, pos_shifted, mask_f, vproj, wo, bo):
    B, H, T, _ = content.shape
    D = vproj.shape[2]

    score_spec = pl.BlockSpec((1, H, T, T), lambda b: (b, 0, 0, 0))
    mask_spec = pl.BlockSpec((1, T, T), lambda b: (b, 0, 0))
    act_spec = pl.BlockSpec((1, T, D), lambda b: (b, 0, 0))
    w_spec = pl.BlockSpec((D, D), lambda b: (0, 0))
    b_spec = pl.BlockSpec((1, D), lambda b: (0, 0))

    return pl.pallas_call(
        _attend_kernel,
        out_shape=jax.ShapeDtypeStruct((B, T, D), jnp.float32),
        grid_spec=pltpu.PrefetchScalarGridSpec(
            num_scalar_prefetch=0,
            grid=(B,),
            in_specs=[score_spec, score_spec, mask_spec, act_spec, w_spec, b_spec],
            out_specs=act_spec,
            scratch_shapes=[pltpu.VMEM((T, D), jnp.float32)],
        ),
        compiler_params=pltpu.CompilerParams(
            dimension_semantics=("parallel",)),
    )(content, pos_shifted, mask_f, vproj, wo, bo)


# ---------------------------------------------------------------------------
# Relative shift (exact mirror of the torch `_relative_shift`) — XLA glue
# ---------------------------------------------------------------------------
def _relative_shift(pos_score):
    B, H, T1, T2 = pos_score.shape
    zeros = jnp.zeros((B, H, T1, 1), pos_score.dtype)
    padded = jnp.concatenate([zeros, pos_score], axis=-1)      # (B,H,T1,T2+1)
    padded = padded.reshape(B, H, T2 + 1, T1)
    return padded[:, :, 1:].reshape(B, H, T1, T2)


# ---------------------------------------------------------------------------
# Forward wrapper + module
# ---------------------------------------------------------------------------
@jax.jit
def _forward_impl(params, query, key, value, pos_embedding, mask_f):
    content, pos_raw, vproj = _proj_scores(
        query, key, value, pos_embedding,
        params["wq"], params["wk"], params["wv"], params["wp"],
        params["bq"], params["bk"], params["bv"],
        params["u_bias"], params["v_bias"])
    pos_shifted = _relative_shift(pos_raw)
    return _attend(content, pos_shifted, mask_f,
                   vproj, params["wo"], params["bo"])


def relative_mha_forward(params, query, key, value, pos_embedding, mask=None):
    B, T, _ = query.shape
    if mask is None:
        mask_f = jnp.zeros((B, T, T), jnp.float32)
    else:
        m = jnp.asarray(mask)
        if m.ndim == 2:                       # (B, T2) -> (B, 1, T2)
            m = m[:, None, :]
        mask_f = jnp.broadcast_to(m, (B, T, T)).astype(jnp.float32)
    return _forward_impl(params, query, key, value, pos_embedding, mask_f)


class RelativeMultiHeadAttention:
    """JAX/Pallas equivalent of the PyTorch RelativeMultiHeadAttention."""

    def __init__(self, d_model: int = 512, num_heads: int = 16,
                 dropout_p: float = 0.1, *, key):
        assert d_model % num_heads == 0, "d_model % num_heads should be zero."
        self.d_model = d_model
        self.num_heads = num_heads
        self.d_head = d_model // num_heads
        self.dropout_p = dropout_p  # inference path only (dropout == identity)

        def xavier(k, shape, fan_in, fan_out):
            limit = math.sqrt(6.0 / (fan_in + fan_out))
            return jax.random.uniform(k, shape, jnp.float32, -limit, limit)

        D, H, Dh = d_model, num_heads, self.d_head
        ks = jax.random.split(key, 7)
        # Linear weights are stored as (in, out) == torch W^T; biases as (1, D).
        self.params = dict(
            wq=xavier(ks[0], (D, D), D, D), bq=jnp.zeros((1, D), jnp.float32),
            wk=xavier(ks[1], (D, D), D, D), bk=jnp.zeros((1, D), jnp.float32),
            wv=xavier(ks[2], (D, D), D, D), bv=jnp.zeros((1, D), jnp.float32),
            wp=xavier(ks[3], (D, D), D, D),
            u_bias=xavier(ks[4], (H, Dh), Dh, H),
            v_bias=xavier(ks[5], (H, Dh), Dh, H),
            wo=xavier(ks[6], (D, D), D, D), bo=jnp.zeros((1, D), jnp.float32),
        )

    def __call__(self, query, key, value, pos_embedding, mask=None):
        return relative_mha_forward(self.params, query, key, value,
                                    pos_embedding, mask)


# ---------------------------------------------------------------------------
# Pure-JAX reference (mirrors the torch forward op-for-op)
# ---------------------------------------------------------------------------
def _reference_forward(params, query, key, value, pos_embedding, mask=None):
    B, T, D = query.shape
    H, Dh = params["u_bias"].shape
    with jax.default_matmul_precision("highest"):
        qp = query @ params["wq"] + params["bq"]
        kp = key @ params["wk"] + params["bk"]
        vp = value @ params["wv"] + params["bv"]
        pp = pos_embedding @ params["wp"]

        q4 = qp.reshape(B, T, H, Dh)
        k4 = kp.reshape(B, T, H, Dh).transpose(0, 2, 1, 3)     # (B,H,T,Dh)
        v4 = vp.reshape(B, T, H, Dh).transpose(0, 2, 1, 3)
        p4 = pp.reshape(B, T, H, Dh)

        content = jnp.einsum("bihd,bhjd->bhij", q4 + params["u_bias"], k4)
        pos_score = jnp.einsum("bihd,bjhd->bhij", q4 + params["v_bias"], p4)
        pos_score = _relative_shift(pos_score)
        score = (content + pos_score) / math.sqrt(D)
        if mask is not None:
            m = jnp.asarray(mask)
            if m.ndim == 2:
                m = m[:, None, :]
            score = jnp.where(m[:, None, :, :].astype(bool),
                              jnp.float32(-1e9), score)
        attn = jax.nn.softmax(score, axis=-1)
        ctx = jnp.einsum("bhij,bhjd->bhid", attn, v4)
        ctx = ctx.transpose(0, 2, 1, 3).reshape(B, T, D)
        return ctx @ params["wo"] + params["bo"]


if __name__ == "__main__":
    root = jax.random.PRNGKey(0)
    k_param, k_q, k_k, k_v, k_p = jax.random.split(root, 5)

    # Small but TPU-friendly shapes: batch=2, seq=16, d_model=128, heads=4.
    B, T, D, H = 2, 16, 128, 4
    mha = RelativeMultiHeadAttention(d_model=D, num_heads=H, dropout_p=0.1,
                                     key=k_param)

    query = jax.random.normal(k_q, (B, T, D), jnp.float32)
    key_t = jax.random.normal(k_k, (B, T, D), jnp.float32)
    value = jax.random.normal(k_v, (B, T, D), jnp.float32)
    pos_emb = jax.random.normal(k_p, (B, T, D), jnp.float32)

    # Padding mask: hide the last 3 key positions of batch element 1.
    mask = jnp.zeros((B, 1, T), dtype=bool).at[1, 0, T - 3:].set(True)

    out = jax.block_until_ready(mha(query, key_t, value, pos_emb, mask=mask))
    assert out.shape == (B, T, D) and out.dtype == jnp.float32

    ref = _reference_forward(mha.params, query, key_t, value, pos_emb, mask=mask)
    np.testing.assert_allclose(np.asarray(out), np.asarray(ref),
                               rtol=2e-2, atol=2e-2)

    # Also exercise the mask=None path.
    out2 = jax.block_until_ready(mha(query, key_t, value, pos_emb, mask=None))
    ref2 = _reference_forward(mha.params, query, key_t, value, pos_emb, mask=None)
    np.testing.assert_allclose(np.asarray(out2), np.asarray(ref2),
                               rtol=2e-2, atol=2e-2)

    print("KERNEL_OK")
</pallas_src>

<mosaic_0001>
module attributes {stable_mosaic.version = 11 : i64} {
  func.func @_proj_scores_kernel(%arg0: i32, %arg1: memref<1x16x128xf32, #tpu.memory_space<vmem>>, %arg2: memref<1x16x128xf32, #tpu.memory_space<vmem>>, %arg3: memref<1x16x128xf32, #tpu.memory_space<vmem>>, %arg4: memref<1x16x128xf32, #tpu.memory_space<vmem>>, %arg5: memref<128x128xf32, #tpu.memory_space<vmem>>, %arg6: memref<128x128xf32, #tpu.memory_space<vmem>>, %arg7: memref<128x128xf32, #tpu.memory_space<vmem>>, %arg8: memref<128x128xf32, #tpu.memory_space<vmem>>, %arg9: memref<1x128xf32, #tpu.memory_space<vmem>>, %arg10: memref<1x128xf32, #tpu.memory_space<vmem>>, %arg11: memref<1x128xf32, #tpu.memory_space<vmem>>, %arg12: memref<4x32xf32, #tpu.memory_space<vmem>>, %arg13: memref<4x32xf32, #tpu.memory_space<vmem>>, %arg14: memref<1x4x16x16xf32, #tpu.memory_space<vmem>>, %arg15: memref<1x4x16x16xf32, #tpu.memory_space<vmem>>, %arg16: memref<1x16x128xf32, #tpu.memory_space<vmem>>) attributes {dimension_semantics = [#tpu.dimension_semantics<parallel>], iteration_bounds = array<i64: 2>, scalar_prefetch = 0 : i64, scratch_operands = 0 : i64, tpu.core_type = #tpu.core_type<tc>, window_params = [{transform_indices = @transform_0, window_bounds = array<i64: 1, 16, 128>}, {transform_indices = @transform_1, window_bounds = array<i64: 1, 16, 128>}, {transform_indices = @transform_2, window_bounds = array<i64: 1, 16, 128>}, {transform_indices = @transform_3, window_bounds = array<i64: 1, 16, 128>}, {pipeline_mode = #tpu.pipeline_mode<synchronous>, transform_indices = @transform_4, window_bounds = array<i64: 128, 128>}, {pipeline_mode = #tpu.pipeline_mode<synchronous>, transform_indices = @transform_5, window_bounds = array<i64: 128, 128>}, {pipeline_mode = #tpu.pipeline_mode<synchronous>, transform_indices = @transform_6, window_bounds = array<i64: 128, 128>}, {pipeline_mode = #tpu.pipeline_mode<synchronous>, transform_indices = @transform_7, window_bounds = array<i64: 128, 128>}, {pipeline_mode = #tpu.pipeline_mode<synchronous>, transform_indices = @transform_8, window_bounds = array<i64: 1, 128>}, {pipeline_mode = #tpu.pipeline_mode<synchronous>, transform_indices = @transform_9, window_bounds = array<i64: 1, 128>}, {pipeline_mode = #tpu.pipeline_mode<synchronous>, transform_indices = @transform_10, window_bounds = array<i64: 1, 128>}, {pipeline_mode = #tpu.pipeline_mode<synchronous>, transform_indices = @transform_11, window_bounds = array<i64: 4, 32>}, {pipeline_mode = #tpu.pipeline_mode<synchronous>, transform_indices = @transform_12, window_bounds = array<i64: 4, 32>}, {transform_indices = @transform_13, window_bounds = array<i64: 1, 4, 16, 16>}, {transform_indices = @transform_14, window_bounds = array<i64: 1, 4, 16, 16>}, {transform_indices = @transform_15, window_bounds = array<i64: 1, 16, 128>}]} {
    %c0 = arith.constant 0 : index
    %c0_0 = arith.constant 0 : index
    %c0_1 = arith.constant 0 : index
    %0 = vector.load %arg1[%c0, %c0_0, %c0_1] : memref<1x16x128xf32, #tpu.memory_space<vmem>>, vector<1x16x128xf32>
    %1 = vector.shape_cast %0 : vector<1x16x128xf32> to vector<16x128xf32>
    %c0_2 = arith.constant 0 : index
    %c0_3 = arith.constant 0 : index
    %c0_4 = arith.constant 0 : index
    %2 = vector.load %arg2[%c0_2, %c0_3, %c0_4] : memref<1x16x128xf32, #tpu.memory_space<vmem>>, vector<1x16x128xf32>
    %3 = vector.shape_cast %2 : vector<1x16x128xf32> to vector<16x128xf32>
    %c0_5 = arith.constant 0 : index
    %c0_6 = arith.constant 0 : index
    %c0_7 = arith.constant 0 : index
    %4 = vector.load %arg3[%c0_5, %c0_6, %c0_7] : memref<1x16x128xf32, #tpu.memory_space<vmem>>, vector<1x16x128xf32>
    %5 = vector.shape_cast %4 : vector<1x16x128xf32> to vector<16x128xf32>
    %c0_8 = arith.constant 0 : index
    %c0_9 = arith.constant 0 : index
    %c0_10 = arith.constant 0 : index
    %6 = vector.load %arg4[%c0_8, %c0_9, %c0_10] : memref<1x16x128xf32, #tpu.memory_space<vmem>>, vector<1x16x128xf32>
    %7 = vector.shape_cast %6 : vector<1x16x128xf32> to vector<16x128xf32>
    %c0_11 = arith.constant 0 : index
    %c0_12 = arith.constant 0 : index
    %8 = vector.load %arg5[%c0_11, %c0_12] : memref<128x128xf32, #tpu.memory_space<vmem>>, vector<128x128xf32>
    %cst = arith.constant dense<0.000000e+00> : vector<16x128xf32>
    %9 = tpu.matmul %1, %8, %cst {dimension_numbers = #tpu.dot_dimension_numbers<[1], [0], [0], [1], [0, 0, 1, 1], [], []>} : vector<16x128xf32>, vector<128x128xf32>, vector<16x128xf32> -> vector<16x128xf32>
    %c0_13 = arith.constant 0 : index
    %c0_14 = arith.constant 0 : index
    %10 = vector.load %arg9[%c0_13, %c0_14] : memref<1x128xf32, #tpu.memory_space<vmem>>, vector<1x128xf32>
    %11 = vector.broadcast %10 : vector<1x128xf32> to vector<16x128xf32>
    %12 = arith.addf %9, %11 : vector<16x128xf32>
    %c0_15 = arith.constant 0 : index
    %c0_16 = arith.constant 0 : index
    %13 = vector.load %arg6[%c0_15, %c0_16] : memref<128x128xf32, #tpu.memory_space<vmem>>, vector<128x128xf32>
    %cst_17 = arith.constant dense<0.000000e+00> : vector<16x128xf32>
    %14 = tpu.matmul %3, %13, %cst_17 {dimension_numbers = #tpu.dot_dimension_numbers<[1], [0], [0], [1], [0, 0, 1, 1], [], []>} : vector<16x128xf32>, vector<128x128xf32>, vector<16x128xf32> -> vector<16x128xf32>
    %c0_18 = arith.constant 0 : index
    %c0_19 = arith.constant 0 : index
    %15 = vector.load %arg10[%c0_18, %c0_19] : memref<1x128xf32, #tpu.memory_space<vmem>>, vector<1x128xf32>
    %16 = vector.broadcast %15 : vector<1x128xf32> to vector<16x128xf32>
    %17 = arith.addf %14, %16 : vector<16x128xf32>
    %c0_20 = arith.constant 0 : index
    %c0_21 = arith.constant 0 : index
    %18 = vector.load %arg7[%c0_20, %c0_21] : memref<128x128xf32, #tpu.memory_space<vmem>>, vector<128x128xf32>
    %cst_22 = arith.constant dense<0.000000e+00> : vector<16x128xf32>
    %19 = tpu.matmul %5, %18, %cst_22 {dimension_numbers = #tpu.dot_dimension_numbers<[1], [0], [0], [1], [0, 0, 1, 1], [], []>} : vector<16x128xf32>, vector<128x128xf32>, vector<16x128xf32> -> vector<16x128xf32>
    %c0_23 = arith.constant 0 : index
    %c0_24 = arith.constant 0 : index
    %20 = vector.load %arg11[%c0_23, %c0_24] : memref<1x128xf32, #tpu.memory_space<vmem>>, vector<1x128xf32>
    %21 = vector.broadcast %20 : vector<1x128xf32> to vector<16x128xf32>
    %22 = arith.addf %19, %21 : vector<16x128xf32>
    %c0_25 = arith.constant 0 : index
    %c0_26 = arith.constant 0 : index
    %23 = vector.load %arg8[%c0_25, %c0_26] : memref<128x128xf32, #tpu.memory_space<vmem>>, vector<128x128xf32>
    %cst_27 = arith.constant dense<0.000000e+00> : vector<16x128xf32>
    %24 = tpu.matmul %7, %23, %cst_27 {dimension_numbers = #tpu.dot_dimension_numbers<[1], [0], [0], [1], [0, 0, 1, 1], [], []>} : vector<16x128xf32>, vector<128x128xf32>, vector<16x128xf32> -> vector<16x128xf32>
    %c0_28 = arith.constant 0 : index
    %c0_29 = arith.constant 0 : index
    %c0_30 = arith.constant 0 : index
    %25 = vector.load %arg16[%c0_28, %c0_29, %c0_30] : memref<1x16x128xf32, #tpu.memory_space<vmem>>, vector<1x16x128xf32>
    %26 = vector.shape_cast %25 : vector<1x16x128xf32> to vector<16x128xf32>
    %27 = vector.shape_cast %22 : vector<16x128xf32> to vector<1x16x128xf32>
    tpu.vector_store %arg16[%c0_28, %c0_29, %c0_30], %27 {strides = array<i32>} : memref<1x16x128xf32, #tpu.memory_space<vmem>>, vector<1x16x128xf32>,
    %28 = vector.extract_strided_slice %12 {offsets = [0, 0], sizes = [16, 32], strides = [1, 1]} : vector<16x128xf32> to vector<16x32xf32>
    %29 = vector.extract_strided_slice %17 {offsets = [0, 0], sizes = [16, 32], strides = [1, 1]} : vector<16x128xf32> to vector<16x32xf32>
    %30 = vector.extract_strided_slice %24 {offsets = [0, 0], sizes = [16, 32], strides = [1, 1]} : vector<16x128xf32> to vector<16x32xf32>
    %c0_31 = arith.constant 0 : index
    %c0_32 = arith.constant 0 : index
    %31 = vector.load %arg12[%c0_31, %c0_32] : memref<4x32xf32, #tpu.memory_space<vmem>>, vector<1x32xf32>
    %c0_33 = arith.constant 0 : index
    %c0_34 = arith.constant 0 : index
    %32 = vector.load %arg13[%c0_33, %c0_34] : memref<4x32xf32, #tpu.memory_space<vmem>>, vector<1x32xf32>
    %33 = vector.broadcast %31 : vector<1x32xf32> to vector<16x32xf32>
    %34 = arith.addf %28, %33 : vector<16x32xf32>
    %cst_35 = arith.constant dense<0.000000e+00> : vector<16x16xf32>
    %35 = tpu.matmul %34, %29, %cst_35 {dimension_numbers = #tpu.dot_dimension_numbers<[1], [1], [0], [0], [0, 0, 1, 0], [], []>} : vector<16x32xf32>, vector<16x32xf32>, vector<16x16xf32> -> vector<16x16xf32>
    %c0_36 = arith.constant 0 : index
    %c0_37 = arith.constant 0 : index
    %c0_38 = arith.constant 0 : index
    %c0_39 = arith.constant 0 : index
    %36 = vector.load %arg14[%c0_36, %c0_37, %c0_38, %c0_39] : memref<1x4x16x16xf32, #tpu.memory_space<vmem>>, vector<1x1x16x16xf32>
    %37 = vector.shape_cast %36 : vector<1x1x16x16xf32> to vector<16x16xf32>
    %38 = vector.shape_cast %35 : vector<16x16xf32> to vector<1x1x16x16xf32>
    tpu.vector_store %arg14[%c0_36, %c0_37, %c0_38, %c0_39], %38 {strides = array<i32>} : memref<1x4x16x16xf32, #tpu.memory_space<vmem>>, vector<1x1x16x16xf32>,
    %39 = vector.broadcast %32 : vector<1x32xf32> to vector<16x32xf32>
    %40 = arith.addf %28, %39 : vector<16x32xf32>
    %cst_40 = arith.constant dense<0.000000e+00> : vector<16x16xf32>
    %41 = tpu.matmul %40, %30, %cst_40 {dimension_numbers = #tpu.dot_dimension_numbers<[1], [1], [0], [0], [0, 0, 1, 0], [], []>} : vector<16x32xf32>, vector<16x32xf32>, vector<16x16xf32> -> vector<16x16xf32>
    %c0_41 = arith.constant 0 : index
    %c0_42 = arith.constant 0 : index
    %c0_43 = arith.constant 0 : index
    %c0_44 = arith.constant 0 : index
    %42 = vector.load %arg15[%c0_41, %c0_42, %c0_43, %c0_44] : memref<1x4x16x16xf32, #tpu.memory_space<vmem>>, vector<1x1x16x16xf32>
    %43 = vector.shape_cast %42 : vector<1x1x16x16xf32> to vector<16x16xf32>
    %44 = vector.shape_cast %41 : vector<16x16xf32> to vector<1x1x16x16xf32>
    tpu.vector_store %arg15[%c0_41, %c0_42, %c0_43, %c0_44], %44 {strides = array<i32>} : memref<1x4x16x16xf32, #tpu.memory_space<vmem>>, vector<1x1x16x16xf32>,
    %45 = vector.extract_strided_slice %12 {offsets = [0, 32], sizes = [16, 32], strides = [1, 1]} : vector<16x128xf32> to vector<16x32xf32>
    %46 = vector.extract_strided_slice %17 {offsets = [0, 32], sizes = [16, 32], strides = [1, 1]} : vector<16x128xf32> to vector<16x32xf32>
    %47 = vector.extract_strided_slice %24 {offsets = [0, 32], sizes = [16, 32], strides = [1, 1]} : vector<16x128xf32> to vector<16x32xf32>
    %c1 = arith.constant 1 : index
    %c0_45 = arith.constant 0 : index
    %48 = vector.load %arg12[%c1, %c0_45] : memref<4x32xf32, #tpu.memory_space<vmem>>, vector<1x32xf32>
    %c1_46 = arith.constant 1 : index
    %c0_47 = arith.constant 0 : index
    %49 = vector.load %arg13[%c1_46, %c0_47] : memref<4x32xf32, #tpu.memory_space<vmem>>, vector<1x32xf32>
    %50 = vector.broadcast %48 : vector<1x32xf32> to vector<16x32xf32>
    %51 = arith.addf %45, %50 : vector<16x32xf32>
    %cst_48 = arith.constant dense<0.000000e+00> : vector<16x16xf32>
    %52 = tpu.matmul %51, %46, %cst_48 {dimension_numbers = #tpu.dot_dimension_numbers<[1], [1], [0], [0], [0, 0, 1, 0], [], []>} : vector<16x32xf32>, vector<16x32xf32>, vector<16x16xf32> -> vector<16x16xf32>
    %c0_49 = arith.constant 0 : index
    %c1_50 = arith.constant 1 : index
    %c0_51 = arith.constant 0 : index
    %c0_52 = arith.constant 0 : index
    %53 = vector.load %arg14[%c0_49, %c1_50, %c0_51, %c0_52] : memref<1x4x16x16xf32, #tpu.memory_space<vmem>>, vector<1x1x16x16xf32>
    %54 = vector.shape_cast %53 : vector<1x1x16x16xf32> to vector<16x16xf32>
    %55 = vector.shape_cast %52 : vector<16x16xf32> to vector<1x1x16x16xf32>
    tpu.vector_store %arg14[%c0_49, %c1_50, %c0_51, %c0_52], %55 {strides = array<i32>} : memref<1x4x16x16xf32, #tpu.memory_space<vmem>>, vector<1x1x16x16xf32>,
    %56 = vector.broadcast %49 : vector<1x32xf32> to vector<16x32xf32>
    %57 = arith.addf %45, %56 : vector<16x32xf32>
    %cst_53 = arith.constant dense<0.000000e+00> : vector<16x16xf32>
    %58 = tpu.matmul %57, %47, %cst_53 {dimension_numbers = #tpu.dot_dimension_numbers<[1], [1], [0], [0], [0, 0, 1, 0], [], []>} : vector<16x32xf32>, vector<16x32xf32>, vector<16x16xf32> -> vector<16x16xf32>
    %c0_54 = arith.constant 0 : index
    %c1_55 = arith.constant 1 : index
    %c0_56 = arith.constant 0 : index
    %c0_57 = arith.constant 0 : index
    %59 = vector.load %arg15[%c0_54, %c1_55, %c0_56, %c0_57] : memref<1x4x16x16xf32, #tpu.memory_space<vmem>>, vector<1x1x16x16xf32>
    %60 = vector.shape_cast %59 : vector<1x1x16x16xf32> to vector<16x16xf32>
    %61 = vector.shape_cast %58 : vector<16x16xf32> to vector<1x1x16x16xf32>
    tpu.vector_store %arg15[%c0_54, %c1_55, %c0_56, %c0_57], %61 {strides = array<i32>} : memref<1x4x16x16xf32, #tpu.memory_space<vmem>>, vector<1x1x16x16xf32>,
    %62 = vector.extract_strided_slice %12 {offsets = [0, 64], sizes = [16, 32], strides = [1, 1]} : vector<16x128xf32> to vector<16x32xf32>
    %63 = vector.extract_strided_slice %17 {offsets = [0, 64], sizes = [16, 32], strides = [1, 1]} : vector<16x128xf32> to vector<16x32xf32>
    %64 = vector.extract_strided_slice %24 {offsets = [0, 64], sizes = [16, 32], strides = [1, 1]} : vector<16x128xf32> to vector<16x32xf32>
    %c2 = arith.constant 2 : index
    %c0_58 = arith.constant 0 : index
    %65 = vector.load %arg12[%c2, %c0_58] : memref<4x32xf32, #tpu.memory_space<vmem>>, vector<1x32xf32>
    %c2_59 = arith.constant 2 : index
    %c0_60 = arith.constant 0 : index
    %66 = vector.load %arg13[%c2_59, %c0_60] : memref<4x32xf32, #tpu.memory_space<vmem>>, vector<1x32xf32>
    %67 = vector.broadcast %65 : vector<1x32xf32> to vector<16x32xf32>
    %68 = arith.addf %62, %67 : vector<16x32xf32>
    %cst_61 = arith.constant dense<0.000000e+00> : vector<16x16xf32>
    %69 = tpu.matmul %68, %63, %cst_61 {dimension_numbers = #tpu.dot_dimension_numbers<[1], [1], [0], [0], [0, 0, 1, 0], [], []>} : vector<16x32xf32>, vector<16x32xf32>, vector<16x16xf32> -> vector<16x16xf32>
    %c0_62 = arith.constant 0 : index
    %c2_63 = arith.constant 2 : index
    %c0_64 = arith.constant 0 : index
    %c0_65 = arith.constant 0 : index
    %70 = vector.load %arg14[%c0_62, %c2_63, %c0_64, %c0_65] : memref<1x4x16x16xf32, #tpu.memory_space<vmem>>, vector<1x1x16x16xf32>
    %71 = vector.shape_cast %70 : vector<1x1x16x16xf32> to vector<16x16xf32>
    %72 = vector.shape_cast %69 : vector<16x16xf32> to vector<1x1x16x16xf32>
    tpu.vector_store %arg14[%c0_62, %c2_63, %c0_64, %c0_65], %72 {strides = array<i32>} : memref<1x4x16x16xf32, #tpu.memory_space<vmem>>, vector<1x1x16x16xf32>,
    %73 = vector.broadcast %66 : vector<1x32xf32> to vector<16x32xf32>
    %74 = arith.addf %62, %73 : vector<16x32xf32>
    %cst_66 = arith.constant dense<0.000000e+00> : vector<16x16xf32>
    %75 = tpu.matmul %74, %64, %cst_66 {dimension_numbers = #tpu.dot_dimension_numbers<[1], [1], [0], [0], [0, 0, 1, 0], [], []>} : vector<16x32xf32>, vector<16x32xf32>, vector<16x16xf32> -> vector<16x16xf32>
    %c0_67 = arith.constant 0 : index
    %c2_68 = arith.constant 2 : index
    %c0_69 = arith.constant 0 : index
    %c0_70 = arith.constant 0 : index
    %76 = vector.load %arg15[%c0_67, %c2_68, %c0_69, %c0_70] : memref<1x4x16x16xf32, #tpu.memory_space<vmem>>, vector<1x1x16x16xf32>
    %77 = vector.shape_cast %76 : vector<1x1x16x16xf32> to vector<16x16xf32>
    %78 = vector.shape_cast %75 : vector<16x16xf32> to vector<1x1x16x16xf32>
    tpu.vector_store %arg15[%c0_67, %c2_68, %c0_69, %c0_70], %78 {strides = array<i32>} : memref<1x4x16x16xf32, #tpu.memory_space<vmem>>, vector<1x1x16x16xf32>,
    %79 = vector.extract_strided_slice %12 {offsets = [0, 96], sizes = [16, 32], strides = [1, 1]} : vector<16x128xf32> to vector<16x32xf32>
    %80 = vector.extract_strided_slice %17 {offsets = [0, 96], sizes = [16, 32], strides = [1, 1]} : vector<16x128xf32> to vector<16x32xf32>
    %81 = vector.extract_strided_slice %24 {offsets = [0, 96], sizes = [16, 32], strides = [1, 1]} : vector<16x128xf32> to vector<16x32xf32>
    %c3 = arith.constant 3 : index
    %c0_71 = arith.constant 0 : index
    %82 = vector.load %arg12[%c3, %c0_71] : memref<4x32xf32, #tpu.memory_space<vmem>>, vector<1x32xf32>
    %c3_72 = arith.constant 3 : index
    %c0_73 = arith.constant 0 : index
    %83 = vector.load %arg13[%c3_72, %c0_73] : memref<4x32xf32, #tpu.memory_space<vmem>>, vector<1x32xf32>
    %84 = vector.broadcast %82 : vector<1x32xf32> to vector<16x32xf32>
    %85 = arith.addf %79, %84 : vector<16x32xf32>
    %cst_74 = arith.constant dense<0.000000e+00> : vector<16x16xf32>
    %86 = tpu.matmul %85, %80, %cst_74 {dimension_numbers = #tpu.dot_dimension_numbers<[1], [1], [0], [0], [0, 0, 1, 0], [], []>} : vector<16x32xf32>, vector<16x32xf32>, vector<16x16xf32> -> vector<16x16xf32>
    %c0_75 = arith.constant 0 : index
    %c3_76 = arith.constant 3 : index
    %c0_77 = arith.constant 0 : index
    %c0_78 = arith.constant 0 : index
    %87 = vector.load %arg14[%c0_75, %c3_76, %c0_77, %c0_78] : memref<1x4x16x16xf32, #tpu.memory_space<vmem>>, vector<1x1x16x16xf32>
    %88 = vector.shape_cast %87 : vector<1x1x16x16xf32> to vector<16x16xf32>
    %89 = vector.shape_cast %86 : vector<16x16xf32> to vector<1x1x16x16xf32>
    tpu.vector_store %arg14[%c0_75, %c3_76, %c0_77, %c0_78], %89 {strides = array<i32>} : memref<1x4x16x16xf32, #tpu.memory_space<vmem>>, vector<1x1x16x16xf32>,
    %90 = vector.broadcast %83 : vector<1x32xf32> to vector<16x32xf32>
    %91 = arith.addf %79, %90 : vector<16x32xf32>
    %cst_79 = arith.constant dense<0.000000e+00> : vector<16x16xf32>
    %92 = tpu.matmul %91, %81, %cst_79 {dimension_numbers = #tpu.dot_dimension_numbers<[1], [1], [0], [0], [0, 0, 1, 0], [], []>} : vector<16x32xf32>, vector<16x32xf32>, vector<16x16xf32> -> vector<16x16xf32>
    %c0_80 = arith.constant 0 : index
    %c3_81 = arith.constant 3 : index
    %c0_82 = arith.constant 0 : index
    %c0_83 = arith.constant 0 : index
    %93 = vector.load %arg15[%c0_80, %c3_81, %c0_82, %c0_83] : memref<1x4x16x16xf32, #tpu.memory_space<vmem>>, vector<1x1x16x16xf32>
    %94 = vector.shape_cast %93 : vector<1x1x16x16xf32> to vector<16x16xf32>
    %95 = vector.shape_cast %92 : vector<16x16xf32> to vector<1x1x16x16xf32>
    tpu.vector_store %arg15[%c0_80, %c3_81, %c0_82, %c0_83], %95 {strides = array<i32>} : memref<1x4x16x16xf32, #tpu.memory_space<vmem>>, vector<1x1x16x16xf32>,
    return
  }
  func.func @transform_0(%arg0: i32) -> (i32, i32, i32) {
    %c0_i32 = arith.constant 0 : i32
    %c0_i32_0 = arith.constant 0 : i32
    %c0_i32_1 = arith.constant 0 : i32
    return %arg0, %c0_i32, %c0_i32_0 : i32, i32, i32
  }
  func.func @transform_1(%arg0: i32) -> (i32, i32, i32) {
    %c0_i32 = arith.constant 0 : i32
    %c0_i32_0 = arith.constant 0 : i32
    %c0_i32_1 = arith.constant 0 : i32
    return %arg0, %c0_i32, %c0_i32_0 : i32, i32, i32
  }
  func.func @transform_2(%arg0: i32) -> (i32, i32, i32) {
    %c0_i32 = arith.constant 0 : i32
    %c0_i32_0 = arith.constant 0 : i32
    %c0_i32_1 = arith.constant 0 : i32
    return %arg0, %c0_i32, %c0_i32_0 : i32, i32, i32
  }
  func.func @transform_3(%arg0: i32) -> (i32, i32, i32) {
    %c0_i32 = arith.constant 0 : i32
    %c0_i32_0 = arith.constant 0 : i32
    %c0_i32_1 = arith.constant 0 : i32
    return %arg0, %c0_i32, %c0_i32_0 : i32, i32, i32
  }
  func.func @transform_4(%arg0: i32) -> (i32, i32) {
    %c0_i32 = arith.constant 0 : i32
    %c0_i32_0 = arith.constant 0 : i32
    %c0_i32_1 = arith.constant 0 : i32
    return %c0_i32, %c0_i32_0 : i32, i32
  }
  func.func @transform_5(%arg0: i32) -> (i32, i32) {
    %c0_i32 = arith.constant 0 : i32
    %c0_i32_0 = arith.constant 0 : i32
    %c0_i32_1 = arith.constant 0 : i32
    return %c0_i32, %c0_i32_0 : i32, i32
  }
  func.func @transform_6(%arg0: i32) -> (i32, i32) {
    %c0_i32 = arith.constant 0 : i32
    %c0_i32_0 = arith.constant 0 : i32
    %c0_i32_1 = arith.constant 0 : i32
    return %c0_i32, %c0_i32_0 : i32, i32
  }
  func.func @transform_7(%arg0: i32) -> (i32, i32) {
    %c0_i32 = arith.constant 0 : i32
    %c0_i32_0 = arith.constant 0 : i32
    %c0_i32_1 = arith.constant 0 : i32
    return %c0_i32, %c0_i32_0 : i32, i32
  }
  func.func @transform_8(%arg0: i32) -> (i32, i32) {
    %c0_i32 = arith.constant 0 : i32
    %c0_i32_0 = arith.constant 0 : i32
    %c0_i32_1 = arith.constant 0 : i32
    return %c0_i32, %c0_i32_0 : i32, i32
  }
  func.func @transform_9(%arg0: i32) -> (i32, i32) {
    %c0_i32 = arith.constant 0 : i32
    %c0_i32_0 = arith.constant 0 : i32
    %c0_i32_1 = arith.constant 0 : i32
    return %c0_i32, %c0_i32_0 : i32, i32
  }
  func.func @transform_10(%arg0: i32) -> (i32, i32) {
    %c0_i32 = arith.constant 0 : i32
    %c0_i32_0 = arith.constant 0 : i32
    %c0_i32_1 = arith.constant 0 : i32
    return %c0_i32, %c0_i32_0 : i32, i32
  }
  func.func @transform_11(%arg0: i32) -> (i32, i32) {
    %c0_i32 = arith.constant 0 : i32
    %c0_i32_0 = arith.constant 0 : i32
    %c0_i32_1 = arith.constant 0 : i32
    return %c0_i32, %c0_i32_0 : i32, i32
  }
  func.func @transform_12(%arg0: i32) -> (i32, i32) {
    %c0_i32 = arith.constant 0 : i32
    %c0_i32_0 = arith.constant 0 : i32
    %c0_i32_1 = arith.constant 0 : i32
    return %c0_i32, %c0_i32_0 : i32, i32
  }
  func.func @transform_13(%arg0: i32) -> (i32, i32, i32, i32) {
    %c0_i32 = arith.constant 0 : i32
    %c0_i32_0 = arith.constant 0 : i32
    %c0_i32_1 = arith.constant 0 : i32
    %c0_i32_2 = arith.constant 0 : i32
    return %arg0, %c0_i32, %c0_i32_0, %c0_i32_1 : i32, i32, i32, i32
  }
  func.func @transform_14(%arg0: i32) -> (i32, i32, i32, i32) {
    %c0_i32 = arith.constant 0 : i32
    %c0_i32_0 = arith.constant 0 : i32
    %c0_i32_1 = arith.constant 0 : i32
    %c0_i32_2 = arith.constant 0 : i32
    return %arg0, %c0_i32, %c0_i32_0, %c0_i32_1 : i32, i32, i32, i32
  }
  func.func @transform_15(%arg0: i32) -> (i32, i32, i32) {
    %c0_i32 = arith.constant 0 : i32
    %c0_i32_0 = arith.constant 0 : i32
    %c0_i32_1 = arith.constant 0 : i32
    return %arg0, %c0_i32, %c0_i32_0 : i32, i32, i32
  }
}

module attributes {stable_mosaic.version = 11 : i64} {
  func.func @_attend_kernel(%arg0: i32, %arg1: memref<1x4x16x16xf32, #tpu.memory_space<vmem>>, %arg2: memref<1x4x16x16xf32, #tpu.memory_space<vmem>>, %arg3: memref<1x16x16xf32, #tpu.memory_space<vmem>>, %arg4: memref<1x16x128xf32, #tpu.memory_space<vmem>>, %arg5: memref<128x128xf32, #tpu.memory_space<vmem>>, %arg6: memref<1x128xf32, #tpu.memory_space<vmem>>, %arg7: memref<1x16x128xf32, #tpu.memory_space<vmem>>, %arg8: memref<16x128xf32, #tpu.memory_space<vmem>>) attributes {dimension_semantics = [#tpu.dimension_semantics<parallel>], iteration_bounds = array<i64: 2>, scalar_prefetch = 0 : i64, scratch_operands = 1 : i64, tpu.core_type = #tpu.core_type<tc>, window_params = [{transform_indices = @transform_0, window_bounds = array<i64: 1, 4, 16, 16>}, {transform_indices = @transform_1, window_bounds = array<i64: 1, 4, 16, 16>}, {transform_indices = @transform_2, window_bounds = array<i64: 1, 16, 16>}, {transform_indices = @transform_3, window_bounds = array<i64: 1, 16, 128>}, {pipeline_mode = #tpu.pipeline_mode<synchronous>, transform_indices = @transform_4, window_bounds = array<i64: 128, 128>}, {pipeline_mode = #tpu.pipeline_mode<synchronous>, transform_indices = @transform_5, window_bounds = array<i64: 1, 128>}, {transform_indices = @transform_6, window_bounds = array<i64: 1, 16, 128>}]} {
    %c0 = arith.constant 0 : index
    %c0_0 = arith.constant 0 : index
    %c0_1 = arith.constant 0 : index
    %0 = vector.load %arg3[%c0, %c0_0, %c0_1] : memref<1x16x16xf32, #tpu.memory_space<vmem>>, vector<1x16x16xf32>
    %1 = vector.shape_cast %0 : vector<1x16x16xf32> to vector<16x16xf32>
    %c0_2 = arith.constant 0 : index
    %c0_3 = arith.constant 0 : index
    %c0_4 = arith.constant 0 : index
    %2 = vector.load %arg4[%c0_2, %c0_3, %c0_4] : memref<1x16x128xf32, #tpu.memory_space<vmem>>, vector<1x16x128xf32>
    %3 = vector.shape_cast %2 : vector<1x16x128xf32> to vector<16x128xf32>
    %c0_5 = arith.constant 0 : index
    %c0_6 = arith.constant 0 : index
    %c0_7 = arith.constant 0 : index
    %c0_8 = arith.constant 0 : index
    %4 = vector.load %arg1[%c0_5, %c0_6, %c0_7, %c0_8] : memref<1x4x16x16xf32, #tpu.memory_space<vmem>>, vector<1x1x16x16xf32>
    %5 = vector.shape_cast %4 : vector<1x1x16x16xf32> to vector<16x16xf32>
    %c0_9 = arith.constant 0 : index
    %c0_10 = arith.constant 0 : index
    %c0_11 = arith.constant 0 : index
    %c0_12 = arith.constant 0 : index
    %6 = vector.load %arg2[%c0_9, %c0_10, %c0_11, %c0_12] : memref<1x4x16x16xf32, #tpu.memory_space<vmem>>, vector<1x1x16x16xf32>
    %7 = vector.shape_cast %6 : vector<1x1x16x16xf32> to vector<16x16xf32>
    %8 = arith.addf %5, %7 : vector<16x16xf32>
    %cst = arith.constant 0.0883883461 : f32
    %9 = vector.broadcast %cst : f32 to vector<16x16xf32>
    %10 = arith.mulf %8, %9 : vector<16x16xf32>
    %cst_13 = arith.constant 0.000000e+00 : f32
    %11 = vector.broadcast %cst_13 : f32 to vector<16x16xf32>
    %12 = arith.cmpf ogt, %1, %11 : vector<16x16xf32>
    %cst_14 = arith.constant -1.000000e+09 : f32
    %13 = vector.broadcast %cst_14 : f32 to vector<16x16xf32>
    %14 = arith.select %12, %13, %10 : vector<16x16xi1>, vector<16x16xf32>
    %cst_15 = arith.constant dense<0xFF800000> : vector<16xf32>
    %15 = vector.multi_reduction <maximumf>, %14, %cst_15 [1] : vector<16x16xf32> to vector<16xf32>
    %16 = vector.shape_cast %15 : vector<16xf32> to vector<16x1xf32>
    %17 = vector.broadcast %16 : vector<16x1xf32> to vector<16x16xf32>
    %18 = arith.subf %14, %17 : vector<16x16xf32>
    %19 = math.exp %18 : vector<16x16xf32>
    %cst_16 = arith.constant dense<0.000000e+00> : vector<16xf32>
    %20 = vector.multi_reduction <add>, %19, %cst_16 [1] : vector<16x16xf32> to vector<16xf32>
    %21 = vector.shape_cast %20 : vector<16xf32> to vector<16x1xf32>
    %22 = tpu.reciprocal %21 {approx = true} : vector<16x1xf32> -> vector<16x1xf32>
    %23 = vector.broadcast %22 : vector<16x1xf32> to vector<16x16xf32>
    %24 = arith.mulf %19, %23 : vector<16x16xf32>
    %25 = vector.extract_strided_slice %3 {offsets = [0, 0], sizes = [16, 32], strides = [1, 1]} : vector<16x128xf32> to vector<16x32xf32>
    %cst_17 = arith.constant dense<0.000000e+00> : vector<16x32xf32>
    %26 = tpu.matmul %24, %25, %cst_17 {dimension_numbers = #tpu.dot_dimension_numbers<[1], [0], [0], [1], [0, 0, 1, 1], [], []>} : vector<16x16xf32>, vector<16x32xf32>, vector<16x32xf32> -> vector<16x32xf32>
    %c0_18 = arith.constant 0 : index
    %c0_19 = arith.constant 0 : index
    %27 = vector.load %arg8[%c0_18, %c0_19] : memref<16x128xf32, #tpu.memory_space<vmem>>, vector<16x32xf32>
    tpu.vector_store %arg8[%c0_18, %c0_19], %26 {strides = array<i32>} : memref<16x128xf32, #tpu.memory_space<vmem>>, vector<16x32xf32>,
    %c0_20 = arith.constant 0 : index
    %c1 = arith.constant 1 : index
    %c0_21 = arith.constant 0 : index
    %c0_22 = arith.constant 0 : index
    %28 = vector.load %arg1[%c0_20, %c1, %c0_21, %c0_22] : memref<1x4x16x16xf32, #tpu.memory_space<vmem>>, vector<1x1x16x16xf32>
    %29 = vector.shape_cast %28 : vector<1x1x16x16xf32> to vector<16x16xf32>
    %c0_23 = arith.constant 0 : index
    %c1_24 = arith.constant 1 : index
    %c0_25 = arith.constant 0 : index
    %c0_26 = arith.constant 0 : index
    %30 = vector.load %arg2[%c0_23, %c1_24, %c0_25, %c0_26] : memref<1x4x16x16xf32, #tpu.memory_space<vmem>>, vector<1x1x16x16xf32>
    %31 = vector.shape_cast %30 : vector<1x1x16x16xf32> to vector<16x16xf32>
    %32 = arith.addf %29, %31 : vector<16x16xf32>
    %cst_27 = arith.constant 0.0883883461 : f32
    %33 = vector.broadcast %cst_27 : f32 to vector<16x16xf32>
    %34 = arith.mulf %32, %33 : vector<16x16xf32>
    %cst_28 = arith.constant 0.000000e+00 : f32
    %35 = vector.broadcast %cst_28 : f32 to vector<16x16xf32>
    %36 = arith.cmpf ogt, %1, %35 : vector<16x16xf32>
    %cst_29 = arith.constant -1.000000e+09 : f32
    %37 = vector.broadcast %cst_29 : f32 to vector<16x16xf32>
    %38 = arith.select %36, %37, %34 : vector<16x16xi1>, vector<16x16xf32>
    %cst_30 = arith.constant dense<0xFF800000> : vector<16xf32>
    %39 = vector.multi_reduction <maximumf>, %38, %cst_30 [1] : vector<16x16xf32> to vector<16xf32>
    %40 = vector.shape_cast %39 : vector<16xf32> to vector<16x1xf32>
    %41 = vector.broadcast %40 : vector<16x1xf32> to vector<16x16xf32>
    %42 = arith.subf %38, %41 : vector<16x16xf32>
    %43 = math.exp %42 : vector<16x16xf32>
    %cst_31 = arith.constant dense<0.000000e+00> : vector<16xf32>
    %44 = vector.multi_reduction <add>, %43, %cst_31 [1] : vector<16x16xf32> to vector<16xf32>
    %45 = vector.shape_cast %44 : vector<16xf32> to vector<16x1xf32>
    %46 = tpu.reciprocal %45 {approx = true} : vector<16x1xf32> -> vector<16x1xf32>
    %47 = vector.broadcast %46 : vector<16x1xf32> to vector<16x16xf32>
    %48 = arith.mulf %43, %47 : vector<16x16xf32>
    %49 = vector.extract_strided_slice %3 {offsets = [0, 32], sizes = [16, 32], strides = [1, 1]} : vector<16x128xf32> to vector<16x32xf32>
    %cst_32 = arith.constant dense<0.000000e+00> : vector<16x32xf32>
    %50 = tpu.matmul %48, %49, %cst_32 {dimension_numbers = #tpu.dot_dimension_numbers<[1], [0], [0], [1], [0, 0, 1, 1], [], []>} : vector<16x16xf32>, vector<16x32xf32>, vector<16x32xf32> -> vector<16x32xf32>
    %c0_33 = arith.constant 0 : index
    %c32 = arith.constant 32 : index
    %51 = vector.load %arg8[%c0_33, %c32] : memref<16x128xf32, #tpu.memory_space<vmem>>, vector<16x32xf32>
    tpu.vector_store %arg8[%c0_33, %c32], %50 {strides = array<i32>} : memref<16x128xf32, #tpu.memory_space<vmem>>, vector<16x32xf32>,
    %c0_34 = arith.constant 0 : index
    %c2 = arith.constant 2 : index
    %c0_35 = arith.constant 0 : index
    %c0_36 = arith.constant 0 : index
    %52 = vector.load %arg1[%c0_34, %c2, %c0_35, %c0_36] : memref<1x4x16x16xf32, #tpu.memory_space<vmem>>, vector<1x1x16x16xf32>
    %53 = vector.shape_cast %52 : vector<1x1x16x16xf32> to vector<16x16xf32>
    %c0_37 = arith.constant 0 : index
    %c2_38 = arith.constant 2 : index
    %c0_39 = arith.constant 0 : index
    %c0_40 = arith.constant 0 : index
    %54 = vector.load %arg2[%c0_37, %c2_38, %c0_39, %c0_40] : memref<1x4x16x16xf32, #tpu.memory_space<vmem>>, vector<1x1x16x16xf32>
    %55 = vector.shape_cast %54 : vector<1x1x16x16xf32> to vector<16x16xf32>
    %56 = arith.addf %53, %55 : vector<16x16xf32>
    %cst_41 = arith.constant 0.0883883461 : f32
    %57 = vector.broadcast %cst_41 : f32 to vector<16x16xf32>
    %58 = arith.mulf %56, %57 : vector<16x16xf32>
    %cst_42 = arith.constant 0.000000e+00 : f32
    %59 = vector.broadcast %cst_42 : f32 to vector<16x16xf32>
    %60 = arith.cmpf ogt, %1, %59 : vector<16x16xf32>
    %cst_43 = arith.constant -1.000000e+09 : f32
    %61 = vector.broadcast %cst_43 : f32 to vector<16x16xf32>
    %62 = arith.select %60, %61, %58 : vector<16x16xi1>, vector<16x16xf32>
    %cst_44 = arith.constant dense<0xFF800000> : vector<16xf32>
    %63 = vector.multi_reduction <maximumf>, %62, %cst_44 [1] : vector<16x16xf32> to vector<16xf32>
    %64 = vector.shape_cast %63 : vector<16xf32> to vector<16x1xf32>
    %65 = vector.broadcast %64 : vector<16x1xf32> to vector<16x16xf32>
    %66 = arith.subf %62, %65 : vector<16x16xf32>
    %67 = math.exp %66 : vector<16x16xf32>
    %cst_45 = arith.constant dense<0.000000e+00> : vector<16xf32>
    %68 = vector.multi_reduction <add>, %67, %cst_45 [1] : vector<16x16xf32> to vector<16xf32>
    %69 = vector.shape_cast %68 : vector<16xf32> to vector<16x1xf32>
    %70 = tpu.reciprocal %69 {approx = true} : vector<16x1xf32> -> vector<16x1xf32>
    %71 = vector.broadcast %70 : vector<16x1xf32> to vector<16x16xf32>
    %72 = arith.mulf %67, %71 : vector<16x16xf32>
    %73 = vector.extract_strided_slice %3 {offsets = [0, 64], sizes = [16, 32], strides = [1, 1]} : vector<16x128xf32> to vector<16x32xf32>
    %cst_46 = arith.constant dense<0.000000e+00> : vector<16x32xf32>
    %74 = tpu.matmul %72, %73, %cst_46 {dimension_numbers = #tpu.dot_dimension_numbers<[1], [0], [0], [1], [0, 0, 1, 1], [], []>} : vector<16x16xf32>, vector<16x32xf32>, vector<16x32xf32> -> vector<16x32xf32>
    %c0_47 = arith.constant 0 : index
    %c64 = arith.constant 64 : index
    %75 = vector.load %arg8[%c0_47, %c64] : memref<16x128xf32, #tpu.memory_space<vmem>>, vector<16x32xf32>
    tpu.vector_store %arg8[%c0_47, %c64], %74 {strides = array<i32>} : memref<16x128xf32, #tpu.memory_space<vmem>>, vector<16x32xf32>,
    %c0_48 = arith.constant 0 : index
    %c3 = arith.constant 3 : index
    %c0_49 = arith.constant 0 : index
    %c0_50 = arith.constant 0 : index
    %76 = vector.load %arg1[%c0_48, %c3, %c0_49, %c0_50] : memref<1x4x16x16xf32, #tpu.memory_space<vmem>>, vector<1x1x16x16xf32>
    %77 = vector.shape_cast %76 : vector<1x1x16x16xf32> to vector<16x16xf32>
    %c0_51 = arith.constant 0 : index
    %c3_52 = arith.constant 3 : index
    %c0_53 = arith.constant 0 : index
    %c0_54 = arith.constant 0 : index
    %78 = vector.load %arg2[%c0_51, %c3_52, %c0_53, %c0_54] : memref<1x4x16x16xf32, #tpu.memory_space<vmem>>, vector<1x1x16x16xf32>
    %79 = vector.shape_cast %78 : vector<1x1x16x16xf32> to vector<16x16xf32>
    %80 = arith.addf %77, %79 : vector<16x16xf32>
    %cst_55 = arith.constant 0.0883883461 : f32
    %81 = vector.broadcast %cst_55 : f32 to vector<16x16xf32>
    %82 = arith.mulf %80, %81 : vector<16x16xf32>
    %cst_56 = arith.constant 0.000000e+00 : f32
    %83 = vector.broadcast %cst_56 : f32 to vector<16x16xf32>
    %84 = arith.cmpf ogt, %1, %83 : vector<16x16xf32>
    %cst_57 = arith.constant -1.000000e+09 : f32
    %85 = vector.broadcast %cst_57 : f32 to vector<16x16xf32>
    %86 = arith.select %84, %85, %82 : vector<16x16xi1>, vector<16x16xf32>
    %cst_58 = arith.constant dense<0xFF800000> : vector<16xf32>
    %87 = vector.multi_reduction <maximumf>, %86, %cst_58 [1] : vector<16x16xf32> to vector<16xf32>
    %88 = vector.shape_cast %87 : vector<16xf32> to vector<16x1xf32>
    %89 = vector.broadcast %88 : vector<16x1xf32> to vector<16x16xf32>
    %90 = arith.subf %86, %89 : vector<16x16xf32>
    %91 = math.exp %90 : vector<16x16xf32>
    %cst_59 = arith.constant dense<0.000000e+00> : vector<16xf32>
    %92 = vector.multi_reduction <add>, %91, %cst_59 [1] : vector<16x16xf32> to vector<16xf32>
    %93 = vector.shape_cast %92 : vector<16xf32> to vector<16x1xf32>
    %94 = tpu.reciprocal %93 {approx = true} : vector<16x1xf32> -> vector<16x1xf32>
    %95 = vector.broadcast %94 : vector<16x1xf32> to vector<16x16xf32>
    %96 = arith.mulf %91, %95 : vector<16x16xf32>
    %97 = vector.extract_strided_slice %3 {offsets = [0, 96], sizes = [16, 32], strides = [1, 1]} : vector<16x128xf32> to vector<16x32xf32>
    %cst_60 = arith.constant dense<0.000000e+00> : vector<16x32xf32>
    %98 = tpu.matmul %96, %97, %cst_60 {dimension_numbers = #tpu.dot_dimension_numbers<[1], [0], [0], [1], [0, 0, 1, 1], [], []>} : vector<16x16xf32>, vector<16x32xf32>, vector<16x32xf32> -> vector<16x32xf32>
    %c0_61 = arith.constant 0 : index
    %c96 = arith.constant 96 : index
    %99 = vector.load %arg8[%c0_61, %c96] : memref<16x128xf32, #tpu.memory_space<vmem>>, vector<16x32xf32>
    tpu.vector_store %arg8[%c0_61, %c96], %98 {strides = array<i32>} : memref<16x128xf32, #tpu.memory_space<vmem>>, vector<16x32xf32>,
    %c0_62 = arith.constant 0 : index
    %c0_63 = arith.constant 0 : index
    %100 = vector.load %arg8[%c0_62, %c0_63] : memref<16x128xf32, #tpu.memory_space<vmem>>, vector<16x128xf32>
    %c0_64 = arith.constant 0 : index
    %c0_65 = arith.constant 0 : index
    %101 = vector.load %arg5[%c0_64, %c0_65] : memref<128x128xf32, #tpu.memory_space<vmem>>, vector<128x128xf32>
    %cst_66 = arith.constant dense<0.000000e+00> : vector<16x128xf32>
    %102 = tpu.matmul %100, %101, %cst_66 {dimension_numbers = #tpu.dot_dimension_numbers<[1], [0], [0], [1], [0, 0, 1, 1], [], []>} : vector<16x128xf32>, vector<128x128xf32>, vector<16x128xf32> -> vector<16x128xf32>
    %c0_67 = arith.constant 0 : index
    %c0_68 = arith.constant 0 : index
    %103 = vector.load %arg6[%c0_67, %c0_68] : memref<1x128xf32, #tpu.memory_space<vmem>>, vector<1x128xf32>
    %104 = vector.broadcast %103 : vector<1x128xf32> to vector<16x128xf32>
    %105 = arith.addf %102, %104 : vector<16x128xf32>
    %c0_69 = arith.constant 0 : index
    %c0_70 = arith.constant 0 : index
    %c0_71 = arith.constant 0 : index
    %106 = vector.load %arg7[%c0_69, %c0_70, %c0_71] : memref<1x16x128xf32, #tpu.memory_space<vmem>>, vector<1x16x128xf32>
    %107 = vector.shape_cast %106 : vector<1x16x128xf32> to vector<16x128xf32>
    %108 = vector.shape_cast %105 : vector<16x128xf32> to vector<1x16x128xf32>
    tpu.vector_store %arg7[%c0_69, %c0_70, %c0_71], %108 {strides = array<i32>} : memref<1x16x128xf32, #tpu.memory_space<vmem>>, vector<1x16x128xf32>,
    return
  }
  func.func @transform_0(%arg0: i32) -> (i32, i32, i32, i32) {
    %c0_i32 = arith.constant 0 : i32
    %c0_i32_0 = arith.constant 0 : i32
    %c0_i32_1 = arith.constant 0 : i32
    %c0_i32_2 = arith.constant 0 : i32
    return %arg0, %c0_i32, %c0_i32_0, %c0_i32_1 : i32, i32, i32, i32
  }
  func.func @transform_1(%arg0: i32) -> (i32, i32, i32, i32) {
    %c0_i32 = arith.constant 0 : i32
    %c0_i32_0 = arith.constant 0 : i32
    %c0_i32_1 = arith.constant 0 : i32
    %c0_i32_2 = arith.constant 0 : i32
    return %arg0, %c0_i32, %c0_i32_0, %c0_i32_1 : i32, i32, i32, i32
  }
  func.func @transform_2(%arg0: i32) -> (i32, i32, i32) {
    %c0_i32 = arith.constant 0 : i32
    %c0_i32_0 = arith.constant 0 : i32
    %c0_i32_1 = arith.constant 0 : i32
    return %arg0, %c0_i32, %c0_i32_0 : i32, i32, i32
  }
  func.func @transform_3(%arg0: i32) -> (i32, i32, i32) {
    %c0_i32 = arith.constant 0 : i32
    %c0_i32_0 = arith.constant 0 : i32
    %c0_i32_1 = arith.constant 0 : i32
    return %arg0, %c0_i32, %c0_i32_0 : i32, i32, i32
  }
  func.func @transform_4(%arg0: i32) -> (i32, i32) {
    %c0_i32 = arith.constant 0 : i32
    %c0_i32_0 = arith.constant 0 : i32
    %c0_i32_1 = arith.constant 0 : i32
    return %c0_i32, %c0_i32_0 : i32, i32
  }
  func.func @transform_5(%arg0: i32) -> (i32, i32) {
    %c0_i32 = arith.constant 0 : i32
    %c0_i32_0 = arith.constant 0 : i32
    %c0_i32_1 = arith.constant 0 : i32
    return %c0_i32, %c0_i32_0 : i32, i32
  }
  func.func @transform_6(%arg0: i32) -> (i32, i32, i32) {
    %c0_i32 = arith.constant 0 : i32
    %c0_i32_0 = arith.constant 0 : i32
    %c0_i32_1 = arith.constant 0 : i32
    return %arg0, %c0_i32, %c0_i32_0 : i32, i32, i32
  }
}

</mosaic_0001>

<bundles_post_ra>
// kernel: _forward_impl.3
= control target key start
LH: loop header
LB: loop body
LE: loop exit
PB: predicated region body
PF: predicated region fallthrough
CT: control target
= control target key end

     0   :  { %11 = vsyncpa [#allocation4], 0  ;;  %s1686_s0 = inlined_call_operand.vmem [shape: f32[2,4,16,16], index: 0, kind: input, shape index: {}]   ;;  %s1687_s1 = inlined_call_operand.vmem [shape: f32[2,4,16,16], index: 1, kind: input, shape index: {}]   ;;  %s1688_s2 = inlined_call_operand.vmem [shape: f32[2,16,16], index: 2, kind: input, shape index: {}]   ;;  %s1689_s3 = inlined_call_operand.vmem [shape: f32[2,16,128], index: 3, kind: input, shape index: {}]   ;;  %s1690_s4 = inlined_call_operand.vmem [shape: f32[128,128], index: 4, kind: input, shape index: {}]   ;;  %s1691_s5 = inlined_call_operand.vmem [shape: f32[1,128], index: 5, kind: input, shape index: {}]   ;;  %s1692_s6 = inlined_call_operand.hbm [shape: f32[2,16,128], index: 6, kind: output, shape index: {}]  }
   0x1   :  { %13 = vsyncpa [#allocation4 + $0x1], 0  ;;  %s1430_s21 = smov 0   ;;  %s1432_s22 = smov 0  }
   0x2   :  { %s1434_s23 = smov 0   ;;  %s1436_s24 = smov 0  }
   0x3 LB: > { %s1451_s25 = sadd.s32 4294967295, %s1387_s24   ;;  %s1045_s26 = sadd.s32 4294967294, %s1387_s24   ;;  %s1387_s24 = sphi %s1436_s24, %s1698_s24   ;;  %s1383_s23 = sphi %s1434_s23, %s1697_s23   ;;  %s1379_s22 = sphi %s1432_s22, %s1696_s22   ;;  %s1375_s21 = sphi %s1430_s21, %s1695_s21  }
   0x4   : > { %s1455_s27 = sadd.s32 1, %s1387_s24   ;;  %s172_s28 = sadd.s32 1, %s1383_s23 }
   0x5   : > { %s169_s29 = ssub.s32 %s1387_s24, %s1455_s27  ;;  %p182_p0 = scmp.ne.s32.totalorder %s1383_s23, %s1379_s22 }
   0x6   : > { %p170_p1 = scmp.eq.s32.totalorder %s169_s29, 0  ;;  %p183_p2 = scmp.eq.s32.totalorder %s1451_s25, 1 }
   0x7   : > { %p188_p3 = scmp.ne.s32.totalorder %s1379_s22, %s1375_s21  ;;  %p189_p4 = scmp.eq.s32.totalorder %s1045_s26, 1 }
   0x8   : > { %s1466_s30 = scalar_select %p170_p1, %s1383_s23, %s172_s28  }
   0x9   : > { %p1468_p5 = por %p183_p2, %p182_p0  ;;  %p1472_p6 = por %p189_p4, %p188_p3 }
   0xa   : > { %p1048_p7 = scmp.ge.s32.totalorder %s1387_s24, 1  ;;  %p245_p8 = scmp.lt.s32.totalorder %s1387_s24, 3 }
   0xc   : > { %p246_p9 = pnand %p1048_p7, %p245_p8 }
   0xd   : > { %p290_p10 = scmp.lt.s32.totalorder (!%p246_p9), %s1451_s25, 1  ;;  %vm326_vm1 = vcmask (!%p246_p9), 130048   ;;  %s1390_s12 = smov (!%p246_p9), 96   ;;  %vm430_vm3 = vcmask (!%p246_p9), 261120   ;;  %vm564_vm4 = vcmask (!%p246_p9), 523520   ;;  %vm696_vm5 = vcmask (!%p246_p9), 785920  }
   0xe   : > { %249 = sbr.rel (%p246_p9) target bundleno = 978 (0x3d2), region = 44  ;;  %vm828_vm6 = vcmask (!%p246_p9), 1048320   ;;  %s1088_s28 = sshll.u32 (!%p246_p9), %s1451_s25, 8 }
  0x15   : > { %s1480_s9 = scalar_select %p290_p10, %s1451_s25, 1 }
  0x16   : > { %s1392_s25 = smov [#allocation3]  }
  0x17   : > { %s1084_s10 = sshll.u32 %s1480_s9, 6  ;;  %s1086_s11 = sshll.u32 %s1480_s9, 4 }
  0x18   : > { %s1487_s14 = scalar_lea.vmem %s1686_s0, %s1084_s10  ;;  %s1492_s17 = scalar_lea.vmem %s1687_s1, %s1084_s10 }
  0x19   : > { %s304_s20 = scalar_lea.vmem %s1688_s2, %s1086_s11  ;;  %v314_v0 = vld [vmem:[%s1487_s14] sm:$0xff]  ;;  %v1060_v2 = vld [vmem:[%s1487_s14 + $0x10] sm:$0xff]  ;;  %v315_v8 = vld [vmem:[%s1487_s14 + $0x8] sm:$0xff]  ;;  %s309_s29 = scalar_lea.vmem %s1689_s3, %s1086_s11 }
  0x1a   : > { %v316_v1 = vld [vmem:[%s1492_s17] sm:$0xff]  ;;  %v1062_v5 = vld [vmem:[%s1492_s17 + $0x10] sm:$0xff]  ;;  %v311_v6 = vld [vmem:[%s304_s20 + $0x8] sm:$0xff]  ;;  %s1389_s10 = smov 64   ;;  %s1391_s9 = smov 32  }
  0x1b   : > { %v310_v3 = vld [vmem:[%s304_s20] sm:$0xff]  ;;  %v318_v4 = vadd.f32 %v316_v1, %v314_v0  ;;  %v439_v7 = vadd.f32 %v1062_v5, %v1060_v2  ;;  %v317_v9 = vld [vmem:[%s1492_s17 + $0x8] sm:$0xff]  ;;  %v1061_v10 = vld [vmem:[%s1487_s14 + $0x18] sm:$0xff]  ;;  %vm323_vm2 = vcmp.gt.f32.partialorder %v311_v6, 0.0  ;;  %s1329_s15 = sshll.u32 %s1392_s25, 4  ;;  %s1330_s15 = int_to_ptr.vmem [resolvable:$false] %s1329_s15 }
  0x1c   : > { %vm322_vm0 = vcmp.gt.f32.partialorder %v310_v3, 0.0  ;;  %v319_v12 = vadd.f32 %v317_v9, %v315_v8  ;;  %v1063_v13 = vld [vmem:[%s1492_s17 + $0x18] sm:$0xff]  ;;  %v1066_v14 = vld [vmem:[%s1487_s14 + $0x20] sm:$0xff]  ;;  %v1067_v19 = vld [vmem:[%s1487_s14 + $0x28] sm:$0xff]  ;;  %s1331_s16 = scalar_lea.vmem %s1330_s15, 512 }
  0x1d   : > { %v320_v11 = vmul.f32 0.088388346, %v318_v4  ;;  %v1068_v15 = vld [vmem:[%s1492_s17 + $0x20] sm:$0xff]  ;;  %v441_v16 = vmul.f32 0.088388346, %v439_v7  ;;  %v440_v17 = vadd.f32 %v1063_v13, %v1061_v10  ;;  %v1069_v20 = vld [vmem:[%s1492_s17 + $0x28] sm:$0xff] }
  0x1e   : > { %v573_v18 = vadd.f32 %v1068_v15, %v1066_v14  ;;  %v1072_v21 = vld [vmem:[%s1487_s14 + $0x30] sm:$0xff]  ;;  %v321_v23 = vmul.f32 0.088388346, %v319_v12  ;;  %v574_v24 = vadd.f32 %v1069_v20, %v1067_v19  ;;  %v1073_v26 = vld [vmem:[%s1487_s14 + $0x38] sm:$0xff] }
  0x1f   : > { %v324_v22 = vsel %vm322_vm0, -1e+09, %v320_v11  ;;  %v1074_v25 = vld [vmem:[%s1492_s17 + $0x30] sm:$0xff]  ;;  %v443_v28 = vsel %vm322_vm0, -1e+09, %v441_v16  ;;  %v1075_v31 = vld [vmem:[%s1492_s17 + $0x38] sm:$0xff] }
  0x20   : > { %v327_v27 = vsel %vm326_vm1, %v324_v22, -inf  ;;  %v442_v29 = vmul.f32 0.088388346, %v440_v17  ;;  %v705_v30 = vadd.f32 %v1074_v25, %v1072_v21  ;;  %v445_v32 = vsel %vm326_vm1, %v443_v28, -inf  ;;  %v312_v21 = vld [vmem:[%s309_s29] sm:$0xff] }
  0x21   : > { %328 = vmax.xlane.f32.xlu0 %v327_v27  ;;  %v325_v33 = vsel %vm323_vm2, -1e+09, %v321_v23  ;;  %v575_v34 = vmul.f32 0.088388346, %v573_v18  ;;  %v706_v35 = vadd.f32 %v1075_v31, %v1073_v26  ;;  %446 = vmax.xlane.f32.xlu1 %v445_v32  ;;  %v576_v38 = vmul.f32 0.088388346, %v574_v24 }
  0x22   : > { %v330_v36 = vsel %vm326_vm1, %v325_v33, -inf  ;;  %v444_v37 = vsel %vm323_vm2, -1e+09, %v442_v29  ;;  %v707_v41 = vmul.f32 0.088388346, %v705_v30 }
  0x23   : > { %v448_v39 = vsel %vm326_vm1, %v444_v37, -inf  ;;  %v577_v40 = vsel %vm322_vm0, -1e+09, %v575_v34  ;;  %v578_v42 = vsel %vm323_vm2, -1e+09, %v576_v38 }
  0x24   : > { %v708_v43 = vmul.f32 0.088388346, %v706_v35  ;;  %v579_v44 = vsel %vm326_vm1, %v577_v40, -inf  ;;  %v582_v45 = vsel %vm326_vm1, %v578_v42, -inf  ;;  %v709_v46 = vsel %vm322_vm0, -1e+09, %v707_v41 }
  0x25   : > { %331 = vmax.xlane.f32.xlu0 %v330_v36  ;;  %449 = vmax.xlane.f32.xlu1 %v448_v39  ;;  %v711_v48 = vsel %vm326_vm1, %v709_v46, -inf }
  0x26   : > { %v1529_v47 = vsel %vm323_vm2, -1e+09, %v708_v43 }
  0x27   : > { %v714_v49 = vsel %vm326_vm1, %v1529_v47, -inf }
  0x29   : > { %580 = vmax.xlane.f32.xlu0 %v579_v44  ;;  %583 = vmax.xlane.f32.xlu1 %v582_v45 }
  0x2d   : > { %712 = vmax.xlane.f32.xlu0 %v711_v48  ;;  %715 = vmax.xlane.f32.xlu1 %v714_v49 }
  0xae   : > { %v329_v50 = vpop.xlane.xlu0 %328  ;;  %v447_v52 = vpop.xlane.xlu1 %446 }
  0xaf   : > { %v333_v51 = vsub.f32 %v324_v22, %v329_v50  ;;  %v451_v53 = vsub.f32 %v443_v28, %v447_v52  ;;  %v313_v22 = vld [vmem:[%s309_s29 + $0x8] sm:$0xff] }
  0xb0   : > { %v1283_v23 = vpack.i.bf16 %v313_v22, %v312_v21  ;;  %v1186_v24 = vpack.c.bf16 %v313_v22, %v312_v21 }
  0xb1   : > { %v335_v54 = vmul.f32 1.442695, %v333_v51  ;;  %v453_v55 = vmul.f32 1.442695, %v451_v53 }
  0xb2   : > { %v332_v56 = vpop.xlane.xlu0 %331  ;;  %v450_v58 = vpop.xlane.xlu1 %449  ;;  %1187 = vmatprep.subr.bf16.mxu1 %v1186_v24 }
  0xb3   : > { %1293 = vpow2.f32 %v335_v54  ;;  %v334_v57 = vsub.f32 %v325_v33, %v332_v56  ;;  %v452_v59 = vsub.f32 %v444_v37, %v450_v58  ;;  %1189 = vmatpush3.bf16.msra.mxu1 %v1186_v24  ;;  %v844_v24 = vld [vmem:[%s1690_s4 + $0x58] sm:$0xff] }
  0xb4   : > { %1295 = vpow2.f32 %v453_v55 }
  0xb5   : > { %v337_v60 = vmul.f32 1.442695, %v334_v57  ;;  %v455_v61 = vmul.f32 1.442695, %v452_v59 }
  0xb6   : > { %v581_v62 = vpop.xlane.xlu0 %580  ;;  %v584_v0 = vpop.xlane.xlu1 %583 }
  0xb7   : > { %1297 = vpow2.f32 %v337_v60  ;;  %v585_v63 = vsub.f32 %v577_v40, %v581_v62  ;;  %v586_v1 = vsub.f32 %v578_v42, %v584_v0 }
  0xb8   : > { %1299 = vpow2.f32 %v455_v61 }
  0xb9   : > { %v587_v2 = vmul.f32 1.442695, %v585_v63  ;;  %v589_v3 = vmul.f32 1.442695, %v586_v1 }
  0xba   : > { %v713_v4 = vpop.xlane.xlu0 %712  ;;  %v716_v25 = vpop.xlane.xlu1 %715 }
  0xbb   : > { %1301 = vpow2.f32 %v587_v2  ;;  %v717_v5 = vsub.f32 %v709_v46, %v713_v4  ;;  %v718_v26 = vsub.f32 %v1529_v47, %v716_v25  ;;  %v834_v4 = vld [vmem:[%s1690_s4 + $0x8] sm:$0xff] }
  0xbc   : > { %1303 = vpow2.f32 %v589_v3  ;;  %v833_v3 = vld [vmem:[%s1690_s4] sm:$0xff] }
  0xbd   : > { %v1294_v6 = vpop.eup %1293  ;;  %v719_v7 = vmul.f32 1.442695, %v717_v5  ;;  %v721_v27 = vmul.f32 1.442695, %v718_v26  ;;  %v835_v5 = vld [vmem:[%s1690_s4 + $0x10] sm:$0xff]  ;;  %v845_v26 = vld [vmem:[%s1690_s4 + $0x60] sm:$0xff] }
  0xbe   : > { %v1534_v8 = vpop.eup %1295  ;;  %v339_v9 = vsel %vm326_vm1, %v1294_v6, 0.0 }
  0xbf   : > { %1305 = vpow2.f32 %v719_v7  ;;  %340 = vadd.xlane.f32.xlu0 %v339_v9  ;;  %v457_v10 = vsel %vm326_vm1, %v1534_v8, 0.0  ;;  %v1202_v7 = vpack.c.bf16 %v834_v4, %v833_v3 }
  0xc0   : > { %1307 = vpow2.f32 %v721_v27  ;;  %v846_v27 = vld [vmem:[%s1690_s4 + $0x68] sm:$0xff] }
  0xc1   : > { %v1298_v11 = vpop.eup %1297  ;;  %1203 = vmatprep.subr.bf16.mxu0 %v1202_v7 }
  0xc2   : > { %v1539_v12 = vpop.eup %1299  ;;  %v342_v13 = vsel %vm326_vm1, %v1298_v11, 0.0  ;;  %1205 = vmatpush3.bf16.msra.mxu0 %v1202_v7 }
  0xc3   : > { %458 = vadd.xlane.f32.xlu0 %v457_v10  ;;  %343 = vadd.xlane.f32.xlu1 %v342_v13  ;;  %v460_v14 = vsel %vm326_vm1, %v1539_v12, 0.0  ;;  %v837_v10 = vld [vmem:[%s1690_s4 + $0x20] sm:$0xff]  ;;  %v839_v13 = vld [vmem:[%s1690_s4 + $0x30] sm:$0xff] }
  0xc5   : > { %v1544_v15 = vpop.eup %1301 }
  0xc6   : > { %v1546_v16 = vpop.eup %1303  ;;  %v591_v17 = vsel %vm326_vm1, %v1544_v15, 0.0 }
  0xc7   : > { %461 = vadd.xlane.f32.xlu1 %v460_v14  ;;  %592 = vadd.xlane.f32.xlu0 %v591_v17  ;;  %v594_v18 = vsel %vm326_vm1, %v1546_v16, 0.0  ;;  %v840_v14 = vld [vmem:[%s1690_s4 + $0x38] sm:$0xff] }
  0xc8   : > { %v1214_v17 = vpack.c.bf16 %v840_v14, %v839_v13 }
  0xc9   : > { %v1552_v19 = vpop.eup %1305 }
  0xca   : > { %v723_v20 = vsel %vm326_vm1, %v1552_v19, 0.0  ;;  %v1308_v28 = vpop.eup %1307 }
  0xcb   : > { %595 = vadd.xlane.f32.xlu1 %v594_v18  ;;  %724 = vadd.xlane.f32.xlu0 %v723_v20  ;;  %v726_v29 = vsel %vm326_vm1, %v1308_v28, 0.0  ;;  %v841_v18 = vld [vmem:[%s1690_s4 + $0x40] sm:$0xff] }
  0xdc   : > { %1284 = vrot.lane.b32.xlu1 %v1283_v23, %s1389_s10 }
  0xe1   : > { %1279 = vrot.lane.b32.xlu0 %v1283_v23, %s1390_s12 }
 0x100   : > { %727 = vadd.xlane.f32.xlu1 %v726_v29  ;;  %v1226_v29 = vpack.c.bf16 %v846_v27, %v845_v26 }
 0x111   : > { %1289 = vrot.lane.b32.xlu1 %v1283_v23, %s1391_s9  ;;  %v843_v23 = vld [vmem:[%s1690_s4 + $0x50] sm:$0xff] }
 0x112   : > { %v1222_v25 = vpack.c.bf16 %v844_v24, %v843_v23 }
 0x14c   : > { %v341_v30 = vpop.xlane.xlu0 %340 }
 0x14d   : > { %1309 = vrcp.f32 %v341_v30  ;;  %v848_v30 = vld [vmem:[%s1690_s4 + $0x78] sm:$0xff] }
 0x150   : > { %v344_v31 = vpop.xlane.xlu1 %343  ;;  %v459_v32 = vpop.xlane.xlu0 %458 }
 0x151   : > { %1311 = vrcp.f32 %v344_v31 }
 0x152   : > { %1313 = vrcp.f32 %v459_v32 }
 0x154   : > { %v462_v33 = vpop.xlane.xlu1 %461  ;;  %v593_v34 = vpop.xlane.xlu0 %592 }
 0x155   : > { %1315 = vrcp.f32 %v462_v33 }
 0x156   : > { %1317 = vrcp.f32 %v593_v34 }
 0x157   : > { %v1310_v35 = vpop.eup %1309 }
 0x158   : > { %v596_v36 = vpop.xlane.xlu1 %595  ;;  %v725_v37 = vpop.xlane.xlu0 %724  ;;  %v347_v38 = vmul.f32 %v1310_v35, %v1294_v6 }
 0x159   : > { %1319 = vrcp.f32 %v596_v36 }
 0x15a   : > { %1127 = vmatprep.mubr.msk.f32.mxu1 %vm326_vm1, %v347_v38  ;;  %1321 = vrcp.f32 %v725_v37 }
 0x15b   : > { %v1312_v39 = vpop.eup %1311 }
 0x15c   : > { %v1314_v40 = vpop.eup %1313  ;;  %v1285_v41 = vpop.permute.xlu1 %1284  ;;  %v348_v43 = vmul.f32 %v1312_v39, %v1298_v11  ;;  %v838_v11 = vld [vmem:[%s1690_s4 + $0x28] sm:$0xff] }
 0x15d   : > { %v1280_v42 = vpop.permute.xlu0 %1279  ;;  %v1287_v44 = vunpack.i.h.bf16 %v1285_v41  ;;  %v1286_v45 = vunpack.i.l.bf16 %v1285_v41  ;;  %v465_v48 = vmul.f32 %v1314_v40, %v1534_v8  ;;  %v836_v8 = vld [vmem:[%s1690_s4 + $0x18] sm:$0xff] }
 0x15e   : > { %v1282_v46 = vunpack.i.h.bf16 %v1280_v42  ;;  %v1281_v47 = vunpack.i.l.bf16 %v1280_v42  ;;  %1128 = vmatmul.mubr.msk.f32.vlgmr.msra.gmra.mrb[0].mxu1 %vm326_vm1, %v348_v43  ;;  %v1206_v9 = vpack.c.bf16 %v836_v8, %v835_v5  ;;  %v1078_v42 = vld [vmem:[%s1691_s5] ss:$0 sm:$0xff] }
 0x15f   : > { %v1316_v50 = vpop.eup %1315  ;;  %1134 = vmatprep.mubr.msk.f32.mxu1 %vm326_vm1, %v465_v48  ;;  %v1194_v52 = vpack.c.bf16 %v1287_v44, %v1286_v45 }
 0x160   : > { %v1190_v49 = vpack.c.bf16 %v1282_v46, %v1281_v47  ;;  %v1318_v51 = vpop.eup %1317  ;;  %v466_v53 = vmul.f32 %v1316_v50, %v1539_v12  ;;  %1207 = vmatprep.subr.bf16.mxu0 %v1206_v9  ;;  %v1210_v12 = vpack.c.bf16 %v838_v11, %v837_v10 }
 0x161   : > { %v599_v55 = vmul.f32 %v1318_v51, %v1544_v15  ;;  %1209 = vmatpush3.bf16.msra.mxu0 %v1206_v9 }
 0x162   : > { %1191 = vmatprep.subr.bf16.mxu1 %v1190_v49  ;;  %1211 = vmatprep.subr.bf16.mxu0 %v1210_v12 }
 0x163   : > { %1193 = vmatpush3.bf16.msra.mxu1 %v1190_v49  ;;  %v1320_v54 = vpop.eup %1319 }
 0x164   : > { %1195 = vmatprep.subr.bf16.mxu1 %v1194_v52  ;;  %v1322_v56 = vpop.eup %1321  ;;  %v600_v57 = vmul.f32 %v1320_v54, %v1546_v16 }
 0x165   : > { %v731_v58 = vmul.f32 %v1322_v56, %v1552_v19  ;;  %v842_v19 = vld [vmem:[%s1690_s4 + $0x48] sm:$0xff]  ;;  %1213 = vmatpush3.bf16.msra.mxu0 %v1210_v12 }
 0x166   : > { %1135 = vmatmul.mubr.msk.f32.vlgmr.msra.gmra.mrb[2].mxu1 %vm326_vm1, %v466_v53  ;;  %1215 = vmatprep.subr.bf16.mxu0 %v1214_v17  ;;  %v1218_v22 = vpack.c.bf16 %v842_v19, %v841_v18 }
 0x167   : > { %1197 = vmatpush3.bf16.msra.mxu1 %v1194_v52  ;;  %1141 = vmatprep.mubr.msk.f32.mxu1 %vm326_vm1, %v599_v55 }
 0x169   : > { %1217 = vmatpush3.bf16.msra.mxu0 %v1214_v17 }
 0x16a   : > { %1142 = vmatmul.mubr.msk.f32.vlgmr.msra.gmra.mrb[4].mxu1 %vm326_vm1, %v600_v57  ;;  %1219 = vmatprep.subr.bf16.mxu0 %v1218_v22 }
 0x16b   : > { %1148 = vmatprep.mubr.msk.f32.mxu1 %vm326_vm1, %v731_v58 }
 0x16d   : > { %1221 = vmatpush3.bf16.msra.mxu0 %v1218_v22 }
 0x16e   : > { %1223 = vmatprep.subr.bf16.mxu0 %v1222_v25 }
 0x171   : > { %1225 = vmatpush3.bf16.msra.mxu0 %v1222_v25 }
 0x172   : > { %1227 = vmatprep.subr.bf16.mxu0 %v1226_v29 }
 0x175   : > { %1229 = vmatpush3.bf16.msra.mxu0 %v1226_v29 }
 0x18d   : > { %v728_v59 = vpop.xlane.xlu1 %727 }
 0x18e   : > { %1323 = vrcp.f32 %v728_v59 }
 0x191   : > { %v1290_v60 = vpop.permute.xlu1 %1289 }
 0x192   : > { %v1292_v61 = vunpack.i.h.bf16 %v1290_v60  ;;  %v1291_v62 = vunpack.i.l.bf16 %v1290_v60 }
 0x194   : > { %v1198_v63 = vpack.c.bf16 %v1292_v61, %v1291_v62 }
 0x196   : > { %1199 = vmatprep.subr.bf16.mxu1 %v1198_v63 }
 0x197   : > { %1201 = vmatpush3.bf16.msra.mxu1 %v1198_v63 }
 0x198   : > { %v1324_v0 = vpop.eup %1323 }
 0x199   : > { %v732_v1 = vmul.f32 %v1324_v0, %v1308_v28  ;;  %v847_v28 = vld [vmem:[%s1690_s4 + $0x70] sm:$0xff] }
 0x19a   : > { %v1230_v31 = vpack.c.bf16 %v848_v30, %v847_v28 }
 0x19b   : > { %1149 = vmatmul.mubr.msk.f32.vlgmr.msra.gmra.mrb[6].mxu1 %vm326_vm1, %v732_v1 }
 0x19c   : > { %1231 = vmatprep.subr.bf16.mxu0 %v1230_v31 }
 0x19d   : > { %1233 = vmatpush3.bf16.msra.mxu0 %v1230_v31 }
 0x231   : > { %v1129_v2 = vpop.f32.mrb[0].mxu1 }
 0x232   : > { %432 = vst.msk [vmem:[#allocation2 + $0x8] sm:$0xff] %vm430_vm3, %v1129_v2  ;;  %v421_v6 = vpop.f32.mrb[1].mxu1 }
 0x233   : > { %431 = vst.msk [vmem:[#allocation2] sm:$0xff] %vm430_vm3, %v421_v6 }
 0x239   : > { %v1136_v15 = vpop.f32.mrb[2].mxu1 }
 0x23a   : > { %560 = vrot.lane.b32.xlu0 %v1136_v15, %s1391_s9  ;;  %v547_v16 = vpop.f32.mrb[3].mxu1 }
 0x23b   : > { %558 = vrot.lane.b32.xlu1 %v547_v16, %s1391_s9 }
 0x23d   : > { %v1143_v20 = vpop.f32.mrb[4].mxu1 }
 0x23e   : > { %692 = vrot.lane.b32.xlu0 %v1143_v20, %s1389_s10  ;;  %v679_v21 = vpop.f32.mrb[5].mxu1 }
 0x23f   : > { %690 = vrot.lane.b32.xlu1 %v679_v21, %s1389_s10  ;;  %s1643_s10 = scalar_lea.hbm %s1692_s6, %s1088_s28 }
 0x26e   : > { %v1150_v32 = vpop.f32.mrb[6].mxu1 }
 0x26f   : > { %824 = vrot.lane.b32.xlu0 %v1150_v32, %s1390_s12  ;;  %v811_v33 = vpop.f32.mrb[7].mxu1 }
 0x270   : > { %822 = vrot.lane.b32.xlu1 %v811_v33, %s1390_s12  ;;  %s287_s12 = sand.u32 1, %s1379_s22  }
 0x271   : > { %s1049_s18 = sshll.u32 %s287_s12, 4  ;;  %s1645_s13 = scalar_lea.sflag [#allocation4], %s287_s12 }
 0x272   : > { %s289_s20 = scalar_lea.vmem [#allocation3], %s1049_s18 }
 0x273   : > { %s947_s26 = sshll.u32 %s289_s20, 4  ;;  %s1638_s26 = int_to_ptr.vmem [resolvable:$true] %s947_s26 }
 0x274   : > { %s1325_s14 = scalar_lea.vmem %s1638_s26, 256  ;;  %p1332_p0 = scmp.lt.s32.totalorder %s1638_s26, %s1330_s15 }
 0x275   : > { %p1326_p11 = scmp.ne.s32.totalorder %s1638_s26, %s1325_s14  ;;  %p1333_p1 = scmp.lt.s32.totalorder %s1331_s16, %s1325_s14 }
 0x277   : > { %p1327_p12 = pnand %p1326_p11, %p1468_p5  ;;  %p1334_p2 = por %p1333_p1, %p1332_p0 }
 0x279   : > { %p1328_p13 = pneg %p1327_p12 }
 0x27b   : > { %p1335_p3 = pnand %p1334_p2, %p1328_p13 }
 0x2ac   : > { %v561_v34 = vpop.permute.xlu0 %560 }
 0x2ad   : > { %566 = vst.msk [vmem:[#allocation2 + $0x8] sm:$0xff] %vm564_vm4, %v561_v34  ;;  %v559_v35 = vpop.permute.xlu1 %558 }
 0x2ae   : > { %565 = vst.msk [vmem:[#allocation2] sm:$0xff] %vm564_vm4, %v559_v35 }
 0x2b0   : > { %v693_v36 = vpop.permute.xlu0 %692 }
 0x2b1   : > { %698 = vst.msk [vmem:[#allocation2 + $0x8] sm:$0xff] %vm696_vm5, %v693_v36  ;;  %v691_v37 = vpop.permute.xlu1 %690 }
 0x2b2   : > { %697 = vst.msk [vmem:[#allocation2] sm:$0xff] %vm696_vm5, %v691_v37 }
 0x2e1   : > { %v825_v38 = vpop.permute.xlu0 %824 }
 0x2e2   : > { %830 = vst.msk [vmem:[#allocation2 + $0x8] sm:$0xff] %vm828_vm6, %v825_v38  ;;  %v823_v39 = vpop.permute.xlu1 %822 }
 0x2e3   : > { %829 = vst.msk [vmem:[#allocation2] sm:$0xff] %vm828_vm6, %v823_v39 }
 0x2e9   : > { %v832_v41 = vld [vmem:[#allocation2 + $0x8] sm:$0xff] }
 0x2ea   : > { %v831_v40 = vld [vmem:[#allocation2] sm:$0xff] }
 0x2eb   : > { %1183 = vmatprep.mubr.f32.mxu0 %v831_v40 }
 0x2ec   : > { %1184 = vmatmul.mubr.f32.vlgmr.msra.gmra.mrb[0].mxu0 %v832_v41 }
 0x3bf   : > { %v1185_v43 = vpop.f32.mrb[0].mxu0 }
 0x3c0   : > { %v928_v44 = vadd.f32 %v1185_v43, %v1078_v42  ;;  %v922_v45 = vpop.f32.mrb[1].mxu0 }
 0x3c1   : > { %v923_v46 = vadd.f32 %v1078_v42, %v922_v45 }
 0x3c2   : > { %932 = vst [vmem:[%s289_s20 + $0x8] sm:$0xff] %v928_v44 }
 0x3c3   : > { %931 = vst [vmem:[%s289_s20] sm:$0xff] %v923_v46 }
 0x3c4   : > { %1338 = shalt.err (!%p1335_p3)
}
 0x3c5   : > { %s1339_s17 = scalar_lea.hbm %s1643_s10, 256  ;;  %s1343_s19 = scalar_lea.hbm %s1692_s6, 512 }
 0x3c6   : > { %p1340_p4 = scmp.ne.s32.totalorder %s1643_s10, %s1339_s17  ;;  %p1344_p9 = scmp.lt.u32.totalorder %s1643_s10, %s1692_s6 }
 0x3c7   : > { %p1345_p10 = scmp.lt.u32.totalorder %s1343_s19, %s1339_s17  ;;  %p1347_p12 = scmp.lt.u32.totalorder %s1339_s17, %s1643_s10 }
 0x3c8   : > { %p1341_p7 = pnand %p1340_p4, %p1468_p5 }
 0x3c9   : > { %p1346_p11 = por %p1345_p10, %p1344_p9 }
 0x3ca   : > { %p1342_p8 = pneg %p1341_p7 }
 0x3cb   : > { %p1348_p13 = por %p1347_p12, %p1346_p11 }
 0x3cd   : > { %p1349_p0 = pnand %p1348_p13, %p1342_p8 }
 0x3cf   : > { %1352 = shalt.err (!%p1349_p0)
}
 0x3d0   : > { %s1393_s28 = smov 128   ;;  %s1394_s29 = smov 8  }
 0x3d1   : > { %1234 = dma.vmem_to_hbm [thread:$0]  (%p1468_p5), %s1638_s26, 256, %s1643_s10, %s1645_s13, %s1393_s28, %s1393_s28, %s1394_s29  }
 0x3d2 PF: > { %p1240_p1 = scmp.ge.s32.totalorder %s1387_s24, 2  ;;  %s962_s11 = sand.u32 1, %s1375_s21  }
 0x3d3   : > { %s963_s14 = scalar_lea.sflag [#allocation4], %s962_s11 }
 0x3d4   : > { %p1237_p2 = pnand %p1240_p1, %p1472_p6 }
 0x3d6   : > { %1370 = dma.done.wait (!%p1237_p2), %s963_s14, 256  }
 0x3d7   : > { %1372 = vsyncadd (!%p1237_p2), %s963_s14, 4294967040  ;;  %p16_p3 = scmp.ge.s32.totalorder %s1455_s27, 4   ;;  %s1695_s21 = smov %s1379_s22 }
 0x3d8   : > { %s1696_s22 = smov %s1383_s23  ;;  %s1697_s23 = smov %s1466_s30 }
 0x3d9   : > { %s1698_s24 = smov %s1455_s27  ;;  %18 = sbr.rel (!%p16_p3) target bundleno = 3 (0x3), region = 94 }
 0x3e0   :  { %968 = vsyncpa [#allocation4], 1 }
 0x3e1   :  { %970 = vsyncpa [#allocation4 + $0x1], 1 }

// kernel: _forward_impl.2
= control target key start
LH: loop header
LB: loop body
LE: loop exit
PB: predicated region body
PF: predicated region fallthrough
CT: control target
= control target key end

     0   :  { %s3859_s0 = inlined_call_operand.vmem [shape: f32[2,16,128], index: 0, kind: input, shape index: {}]   ;;  %s3860_s1 = inlined_call_operand.hbm [shape: f32[2,16,128], index: 1, kind: input, shape index: {}]   ;;  %s3861_s2 = inlined_call_operand.hbm [shape: f32[2,16,128], index: 2, kind: input, shape index: {}]   ;;  %s3862_s3 = inlined_call_operand.hbm [shape: f32[2,16,128], index: 3, kind: input, shape index: {}]   ;;  %s3863_s4 = inlined_call_operand.hbm [shape: f32[128,128], index: 4, kind: input, shape index: {}]   ;;  %s3864_s5 = inlined_call_operand.hbm [shape: f32[128,128], index: 5, kind: input, shape index: {}]   ;;  %s3865_s6 = inlined_call_operand.hbm [shape: f32[128,128], index: 6, kind: input, shape index: {}]   ;;  %s3866_s7 = inlined_call_operand.hbm [shape: f32[128,128], index: 7, kind: input, shape index: {}]   ;;  %s3867_s8 = inlined_call_operand.vmem [shape: f32[1,128], index: 8, kind: input, shape index: {}]   ;;  %s3868_s9 = inlined_call_operand.hbm [shape: f32[1,128], index: 9, kind: input, shape index: {}]   ;;  %s3869_s10 = inlined_call_operand.hbm [shape: f32[1,128], index: 10, kind: input, shape index: {}]   ;;  %s3870_s11 = inlined_call_operand.vmem [shape: f32[4,32], index: 11, kind: input, shape index: {}]   ;;  %s3871_s12 = inlined_call_operand.vmem [shape: f32[4,32], index: 12, kind: input, shape index: {}]   ;;  %s3872_s13 = inlined_call_operand.vmem [shape: f32[2,4,16,16], index: 13, kind: output, shape index: {0}]   ;;  %s3873_s14 = inlined_call_operand.vmem [shape: f32[2,4,16,16], index: 14, kind: output, shape index: {1}]   ;;  %s3874_s15 = inlined_call_operand.vmem [shape: f32[2,16,128], index: 15, kind: output, shape index: {2}]  }
   0x1   :  { %3897 = sst [smem:[#allocation24_spill]] %s3859_s0 }
   0x2   :  { %3898 = sst [smem:[#allocation25_spill]] %s3861_s2 }
   0x3   :  { %3899 = sst [smem:[#allocation26_spill]] %s3863_s4 }
   0x4   :  { %3900 = sst [smem:[#allocation27_spill]] %s3865_s6 }
   0x5   :  { %3901 = sst [smem:[#allocation28_spill]] %s3867_s8 }
   0x6   :  { %3902 = sst [smem:[#allocation29_spill]] %s3868_s9 }
   0x7   :  { %3903 = sst [smem:[#allocation30_spill]] %s3870_s11 }
   0x8   :  { %3904 = sst [smem:[#allocation31_spill]] %s3871_s12 }
   0x9   :  { %3905 = sst [smem:[#allocation32_spill]] %s3872_s13 }
   0xa   :  { %3906 = sst [smem:[#allocation33_spill]] %s3873_s14 }
   0xb   :  { %3907 = sst [smem:[#allocation34_spill]] %s3874_s15 }
   0xc   :  { %21 = vsyncpa [#allocation3], 0 }
   0xd   :  { %23 = vsyncpa [#allocation3 + $0x1], 0 }
   0xe   :  { %24 = vsyncpa [#allocation5], 0 }
   0xf   :  { %26 = vsyncpa [#allocation5 + $0x1], 0 }
  0x10   :  { %27 = vsyncpa [#allocation8], 0 }
  0x11   :  { %28 = vsyncpa [#allocation11], 0 }
  0x12   :  { %29 = vsyncpa [#allocation14], 0  ;;  %s3321_s18 = smov 0   ;;  %s3323_s19 = smov 0  }
  0x13   :  { %s3325_s20 = smov 0   ;;  %s3327_s21 = smov 0  }
  0x14 LB: > { %s3227_s22 = smov [#allocation7]   ;;  %s3342_s24 = sadd.s32 4294967295, %s3225_s21   ;;  %s3225_s21 = sphi %s3327_s21, %s3946_s21   ;;  %s3221_s20 = sphi %s3325_s20, %s3950_s20   ;;  %s3217_s19 = sphi %s3323_s19, %s3949_s19   ;;  %s3213_s18 = sphi %s3321_s18, %s3948_s18  }
  0x15   : > { %s423_s23 = sshll.u32 %s3227_s22, 4  ;;  %3908 = sst [smem:[#allocation21_spill]] %s3342_s24  ;;  %s3347_s23 = int_to_ptr.vmem [resolvable:$true] %s423_s23 }
  0x16   : > { %p2197_p0 = scmp.ge.s32.totalorder %s3225_s21, 1  ;;  %p3882_p1 = scmp.eq.s32.totalorder %s3342_s24, 0 }
  0x17   : > { %p411_p2 = scmp.lt.s32.totalorder %s3225_s21, 3  ;;  %s3228_s26 = smov [#allocation10]  }
  0x18   : > { %s449_s27 = sshll.u32 %s3228_s26, 4  ;;  %s3229_s29 = smov [#allocation13]   ;;  %s3361_s27 = int_to_ptr.vmem [resolvable:$true] %s449_s27 }
  0x19   : > { %p3349_p3 = pnand %p2197_p0, %p411_p2  ;;  %s479_s30 = sshll.u32 %s3229_s29, 4  ;;  %s3363_s30 = int_to_ptr.vmem [resolvable:$true] %s479_s30 }
  0x1a   : > { %s3911_s4 = sld [smem:[#allocation26_spill]] }
  0x1b   : > { %s3909_s25 = scalar_select %p3349_p3, 1, 0 }
  0x1c   : > { %p2802_p4 = pneg %p3349_p3 }
  0x1e   : > { %p3357_p5 = pnand %p2802_p4, %p3882_p1 }
  0x20   : > { %s3910_s28 = scalar_select %p3357_p5, 1, 0 }
  0x21   : > { %s2917_s22 = scalar_lea.hbm %s3911_s4, 2048  ;;  %p3373_p7 = pneg %p3357_p5 }
  0x22   : > { %p2918_p6 = scmp.ne.s32.totalorder %s3911_s4, %s2917_s22  ;;  %p2924_p10 = scmp.lt.u32.totalorder %s2917_s22, %s3911_s4 }
  0x23   : > { %s3912_s26 = scalar_select %p3373_p7, 1, 0 }
  0x24   : > { %p2920_p8 = pnand %p3373_p7, %p2918_p6 }
  0x26   : > { %p2921_p9 = pneg %p2920_p8 }
  0x28   : > { %p2926_p11 = pnand %p2924_p10, %p2921_p9 }
  0x2a   : > { %2929 = shalt.err (!%p2926_p11)
}
  0x2b   : > { %s2930_s13 = scalar_lea.vmem %s3347_s23, 2048  ;;  %p2938_p2 = scmp.lt.s32.totalorder %s3347_s23, %s3347_s23 }
  0x2c   : > { %p2931_p12 = scmp.ne.s32.totalorder %s3347_s23, %s2930_s13  ;;  %p2939_p4 = scmp.lt.s32.totalorder %s2930_s13, %s2930_s13 }
  0x2e   : > { %p2933_p13 = pnand %p2931_p12, %p3373_p7  ;;  %p2940_p6 = por %p2939_p4, %p2938_p2 }
  0x30   : > { %p2934_p0 = pneg %p2933_p13 }
  0x32   : > { %p2941_p8 = pnand %p2940_p6, %p2934_p0 }
  0x34   : > { %2944 = shalt.err (!%p2941_p8)
}
  0x35   : > { %s3878_s14 = smov 128   ;;  %s3880_s15 = smov 8  }
  0x36   : > { %2805 = dma.hbm_to_vmem [thread:$0]  (!%p3357_p5), %s3911_s4, 2048, %s3347_s23, [#allocation8], %s3878_s14, %s3878_s14, %s3880_s15  }
  0x37   : > { %s3913_s6 = sld [smem:[#allocation27_spill]] }
  0x3d   : > { %s2945_s13 = scalar_lea.hbm %s3913_s6, 2048 }
  0x3e   : > { %p2946_p9 = scmp.ne.s32.totalorder %s3913_s6, %s2945_s13  ;;  %p2952_p12 = scmp.lt.u32.totalorder %s2945_s13, %s3913_s6 }
  0x40   : > { %p2948_p10 = pnand %p2946_p9, %p3373_p7 }
  0x42   : > { %p2949_p11 = pneg %p2948_p10 }
  0x44   : > { %p2954_p13 = pnand %p2952_p12, %p2949_p11 }
  0x46   : > { %2957 = shalt.err (!%p2954_p13)
}
  0x47   : > { %s2958_s23 = scalar_lea.vmem %s3361_s27, 2048  ;;  %p2966_p6 = scmp.lt.s32.totalorder %s3361_s27, %s3361_s27 }
  0x48   : > { %p2959_p0 = scmp.ne.s32.totalorder %s3361_s27, %s2958_s23  ;;  %p2967_p8 = scmp.lt.s32.totalorder %s2958_s23, %s2958_s23 }
  0x4a   : > { %p2961_p2 = pnand %p2959_p0, %p3373_p7  ;;  %p2968_p9 = por %p2967_p8, %p2966_p6 }
  0x4c   : > { %p2962_p4 = pneg %p2961_p2 }
  0x4e   : > { %p2969_p10 = pnand %p2968_p9, %p2962_p4 }
  0x50   : > { %2972 = shalt.err (!%p2969_p10)
}
  0x51   : > { %2811 = dma.hbm_to_vmem [thread:$0]  (!%p3357_p5), %s3913_s6, 2048, %s3361_s27, [#allocation11], %s3878_s14, %s3878_s14, %s3880_s15  }
  0x52   : > { %s3914_s9 = sld [smem:[#allocation29_spill]] }
  0x58   : > { %s2973_s16 = scalar_lea.hbm %s3914_s9, 16 }
  0x59   : > { %p2974_p11 = scmp.ne.s32.totalorder %s3914_s9, %s2973_s16  ;;  %p2980_p0 = scmp.lt.u32.totalorder %s2973_s16, %s3914_s9 }
  0x5b   : > { %p2976_p12 = pnand %p2974_p11, %p3373_p7 }
  0x5d   : > { %p2977_p13 = pneg %p2976_p12 }
  0x5f   : > { %p2982_p2 = pnand %p2980_p0, %p2977_p13 }
  0x61   : > { %2985 = shalt.err (!%p2982_p2)
}
  0x62   : > { %s2986_s27 = scalar_lea.vmem %s3363_s30, 16  ;;  %s2993_s23 = scalar_lea.vmem %s3363_s30, 32 }
  0x63   : > { %p2987_p4 = scmp.ne.s32.totalorder %s3363_s30, %s2986_s27  ;;  %p2994_p9 = scmp.lt.s32.totalorder %s3363_s30, %s3363_s30 }
  0x64   : > { %p2995_p10 = scmp.lt.s32.totalorder %s2993_s23, %s2986_s27 }
  0x65   : > { %p2989_p6 = pnand %p2987_p4, %p3373_p7 }
  0x66   : > { %p2996_p11 = por %p2995_p10, %p2994_p9 }
  0x67   : > { %p2990_p8 = pneg %p2989_p6 }
  0x69   : > { %p2997_p12 = pnand %p2996_p11, %p2990_p8 }
  0x6b   : > { %3000 = shalt.err (!%p2997_p12)
}
  0x6c   : > { %2817 = dma.hbm_to_vmem [thread:$0]  (!%p3357_p5), %s3914_s9, 16, %s3363_s30, [#allocation14]  }
  0x6d   : > { %s3448_s11 = sadd.s32 1, %s3225_s21   ;;  %s68_s16 = sadd.s32 1, %s3221_s20 }
  0x6e   : > { %3915 = sst [smem:[#allocation22_spill]] %s3448_s11  ;;  %s65_s12 = ssub.s32 %s3225_s21, %s3448_s11 }
  0x6f   : > { %p66_p13 = scmp.eq.s32.totalorder %s65_s12, 0  ;;  %p75_p0 = scmp.ne.s32.totalorder %s3221_s20, %s3217_s19 }
  0x70   : > { %p76_p2 = scmp.eq.s32.totalorder %s3225_s21, 0  ;;  %p81_p4 = scmp.ne.s32.totalorder %s3217_s19, %s3213_s18 }
  0x71   : > { %s3459_s17 = scalar_select %p66_p13, %s3221_s20, %s68_s16  }
  0x72   : > { %p77_p6 = por %p76_p2, %p75_p0  ;;  %p3463_p8 = por %p3882_p1, %p81_p4 }
  0x73   : > { %3916 = sst [smem:[#allocation23_spill]] %s3459_s17  ;;  %p2837_p9 = scmp.lt.s32.totalorder %s3225_s21, 2 }
  0x74   : > { %s3917_s22 = scalar_select %p3463_p8, 1, 0 }
  0x75   : > { %s3877_s30 = sand.u32 1, %s3221_s20   ;;  %s3474_s13 = sshll.u32 %s3225_s21, 8 }
  0x76   : > { %s3471_s29 = sshll.u32 %s3877_s30, 4  ;;  %p3476_p10 = pnand %p2837_p9, %p77_p6 }
  0x77   : > { %s536_s18 = sand.u32 1, %s3225_s21   ;;  %s3919_s2 = sld [smem:[#allocation25_spill]] }
  0x78   : > { %s3918_s27 = scalar_select %p3476_p10, 1, 0 }
  0x79   : > { %s540_s12 = scalar_lea.vmem [#allocation4], %s3471_s29  ;;  %s3232_s30 = smov [#allocation9]  }
  0x7a   : > { %s547_s16 = sshll.u32 %s540_s12, 4  ;;  %s3490_s14 = sshll.u32 %s3232_s30, 4  ;;  %s3488_s16 = int_to_ptr.vmem [resolvable:$true] %s547_s16  ;;  %s437_s14 = int_to_ptr.vmem [resolvable:$true] %s3490_s14 }
  0x7b   : > { %s3492_s15 = scalar_lea.sflag [#allocation5], %s536_s18  ;;  %p3498_p12 = pneg %p3476_p10 }
  0x7d   : > { %s3485_s8 = scalar_lea.hbm %s3919_s2, %s3474_s13  ;;  %s3006_s12 = scalar_lea.hbm %s3919_s2, 512 }
  0x7e   : > { %s3001_s4 = scalar_lea.hbm %s3485_s8, 256  ;;  %p3007_p2 = scmp.lt.u32.totalorder %s3485_s8, %s3919_s2 }
  0x7f   : > { %p3002_p11 = scmp.ne.s32.totalorder %s3485_s8, %s3001_s4  ;;  %p3008_p4 = scmp.lt.u32.totalorder %s3006_s12, %s3001_s4 }
  0x80   : > { %s3920_s21 = scalar_select %p3498_p12, 1, 0 }
  0x81   : > { %p3004_p13 = pnand %p3498_p12, %p3002_p11  ;;  %p3009_p6 = por %p3008_p4, %p3007_p2 }
  0x82   : > { %p3010_p9 = scmp.lt.u32.totalorder %s3001_s4, %s3485_s8 }
  0x83   : > { %p3005_p0 = pneg %p3004_p13 }
  0x84   : > { %p3011_p1 = por %p3010_p9, %p3009_p6 }
  0x86   : > { %p3012_p8 = pnand %p3011_p1, %p3005_p0 }
  0x88   : > { %3015 = shalt.err (!%p3012_p8)
}
  0x89   : > { %s3016_s18 = scalar_lea.vmem %s3488_s16, 256  ;;  %s3233_s23 = smov [#allocation4]  }
  0x8a   : > { %p3017_p11 = scmp.ne.s32.totalorder %s3488_s16, %s3016_s18  ;;  %s3021_s0 = sshll.u32 %s3233_s23, 4  ;;  %s3022_s0 = int_to_ptr.vmem [resolvable:$false] %s3021_s0 }
  0x8b   : > { %s3023_s6 = scalar_lea.vmem %s3022_s0, 512  ;;  %p3024_p5 = scmp.lt.s32.totalorder %s3488_s16, %s3022_s0 }
  0x8c   : > { %p3019_p13 = pnand %p3017_p11, %p3498_p12  ;;  %p3025_p7 = scmp.lt.s32.totalorder %s3023_s6, %s3016_s18 }
  0x8e   : > { %p3020_p3 = pneg %p3019_p13  ;;  %p3026_p2 = por %p3025_p7, %p3024_p5 }
  0x90   : > { %p3027_p4 = pnand %p3026_p2, %p3020_p3 }
  0x92   : > { %3030 = shalt.err (!%p3027_p4)
}
  0x93   : > { %s3921_s4 = smov 8   ;;  %s3922_s12 = smov 128  }
  0x94   : > { %2827 = dma.hbm_to_vmem [thread:$0]  (!%p3476_p10), %s3485_s8, 256, %s3488_s16, %s3492_s15, %s3922_s12, %s3922_s12, %s3921_s4  }
  0x95   : > { %s3031_s0 = scalar_lea.hbm %s3864_s5, 2048  ;;  %p3923_p3 = scmp.ne.s32.totalorder %s3912_s26, 0 }
  0x96   : > { %p3032_p1 = scmp.ne.s32.totalorder %s3864_s5, %s3031_s0  ;;  %p3038_p8 = scmp.lt.u32.totalorder %s3031_s0, %s3864_s5 }
  0x98   : > { %p3034_p5 = pnand %p3032_p1, %p3923_p3 }
  0x9a   : > { %p3035_p7 = pneg %p3034_p5 }
  0x9c   : > { %p3040_p0 = pnand %p3038_p8, %p3035_p7 }
  0x9e   : > { %3043 = shalt.err (!%p3040_p0)
}
  0x9f   : > { %s3044_s17 = scalar_lea.vmem %s437_s14, 2048  ;;  %p3052_p13 = scmp.lt.s32.totalorder %s437_s14, %s437_s14 }
  0xa0   : > { %p3045_p6 = scmp.ne.s32.totalorder %s437_s14, %s3044_s17  ;;  %p3053_p2 = scmp.lt.s32.totalorder %s3044_s17, %s3044_s17 }
  0xa2   : > { %p3047_p9 = pnand %p3045_p6, %p3923_p3  ;;  %p3054_p4 = por %p3053_p2, %p3052_p13 }
  0xa4   : > { %p3048_p11 = pneg %p3047_p9 }
  0xa6   : > { %p3055_p10 = pnand %p3054_p4, %p3048_p11 }
  0xa8   : > { %3058 = shalt.err (!%p3055_p10)
}
  0xa9   : > { %p3924_p1 = scmp.ne.s32.totalorder %s3910_s28, 0  ;;  %s3234_s8 = smov [#allocation12]  }
  0xaa   : > { %s462_s16 = sshll.u32 %s3234_s8, 4  ;;  %s3235_s30 = smov [#allocation15]   ;;  %s463_s16 = int_to_ptr.vmem [resolvable:$true] %s462_s16 }
  0xab   : > { %2808 = dma.hbm_to_vmem [thread:$0]  (!%p3924_p1), %s3864_s5, 2048, %s437_s14, [#allocation8], %s3922_s12, %s3922_s12, %s3921_s4  }
  0xac   : > { %s490_s23 = sshll.u32 %s3235_s30, 4  ;;  %s3059_s18 = scalar_lea.hbm %s3866_s7, 2048  ;;  %s491_s23 = int_to_ptr.vmem [resolvable:$true] %s490_s23 }
  0xad   : > { %p3060_p10 = scmp.ne.s32.totalorder %s3866_s7, %s3059_s18  ;;  %p3066_p8 = scmp.lt.u32.totalorder %s3059_s18, %s3866_s7 }
  0xaf   : > { %p3062_p5 = pnand %p3060_p10, %p3923_p3 }
  0xb1   : > { %p3063_p7 = pneg %p3062_p5 }
  0xb3   : > { %p3068_p0 = pnand %p3066_p8, %p3063_p7 }
  0xb5   : > { %3071 = shalt.err (!%p3068_p0)
}
  0xb6   : > { %s3072_s14 = scalar_lea.vmem %s463_s16, 2048  ;;  %p3080_p13 = scmp.lt.s32.totalorder %s463_s16, %s463_s16 }
  0xb7   : > { %p3073_p6 = scmp.ne.s32.totalorder %s463_s16, %s3072_s14  ;;  %p3081_p2 = scmp.lt.s32.totalorder %s3072_s14, %s3072_s14 }
  0xb9   : > { %p3075_p9 = pnand %p3073_p6, %p3923_p3  ;;  %p3082_p4 = por %p3081_p2, %p3080_p13 }
  0xbb   : > { %p3076_p11 = pneg %p3075_p9 }
  0xbd   : > { %p3083_p12 = pnand %p3082_p4, %p3076_p11 }
  0xbf   : > { %3086 = shalt.err (!%p3083_p12)
}
  0xc0   : > { %2814 = dma.hbm_to_vmem [thread:$0]  (!%p3924_p1), %s3866_s7, 2048, %s463_s16, [#allocation11], %s3922_s12, %s3922_s12, %s3921_s4  }
  0xc1   : > { %s3087_s30 = scalar_lea.hbm %s3869_s10, 16 }
  0xc2   : > { %p3088_p10 = scmp.ne.s32.totalorder %s3869_s10, %s3087_s30  ;;  %p3094_p7 = scmp.lt.u32.totalorder %s3087_s30, %s3869_s10 }
  0xc4   : > { %p3090_p12 = pnand %p3088_p10, %p3923_p3 }
  0xc6   : > { %p3091_p5 = pneg %p3090_p12 }
  0xc8   : > { %p3096_p8 = pnand %p3094_p7, %p3091_p5 }
  0xca   : > { %3099 = shalt.err (!%p3096_p8)
}
  0xcb   : > { %s3100_s2 = scalar_lea.vmem %s491_s23, 16  ;;  %s3107_s16 = scalar_lea.vmem %s491_s23, 32 }
  0xcc   : > { %p3101_p0 = scmp.ne.s32.totalorder %s491_s23, %s3100_s2  ;;  %p3108_p11 = scmp.lt.s32.totalorder %s491_s23, %s491_s23 }
  0xcd   : > { %p3109_p13 = scmp.lt.s32.totalorder %s3107_s16, %s3100_s2 }
  0xce   : > { %p3103_p6 = pnand %p3101_p0, %p3923_p3 }
  0xcf   : > { %p3110_p2 = por %p3109_p13, %p3108_p11 }
  0xd0   : > { %p3104_p9 = pneg %p3103_p6 }
  0xd2   : > { %p3111_p4 = pnand %p3110_p2, %p3104_p9 }
  0xd4   : > { %3114 = shalt.err (!%p3111_p4)
}
  0xd5   : > { %2820 = dma.hbm_to_vmem [thread:$0]  (!%p3924_p1), %s3869_s10, 16, %s491_s23, [#allocation14]  }
  0xd6   : > { %s3590_s9 = scalar_lea.hbm %s3860_s1, %s3474_s13  ;;  %s519_s8 = scalar_lea.vmem [#allocation2], %s3471_s29 }
  0xd7   : > { %s526_s28 = sshll.u32 %s519_s8, 4  ;;  %s3599_s17 = scalar_lea.hbm %s3862_s3, %s3474_s13  ;;  %s3593_s28 = int_to_ptr.vmem [resolvable:$true] %s526_s28 }
  0xd8   : > { %s3925_s18 = sand.u32 1, %s3221_s20   ;;  %s3115_s6 = scalar_lea.hbm %s3590_s9, 256 }
  0xd9   : > { %s3603_s23 = scalar_lea.sflag [#allocation3], %s3925_s18  ;;  %p3116_p3 = scmp.ne.s32.totalorder %s3590_s9, %s3115_s6 }
  0xda   : > { %p3926_p1 = scmp.ne.s32.totalorder %s3920_s21, 0  ;;  %s3120_s14 = scalar_lea.hbm %s3860_s1, 512 }
  0xdb   : > { %p3121_p5 = scmp.lt.u32.totalorder %s3590_s9, %s3860_s1  ;;  %p3122_p7 = scmp.lt.u32.totalorder %s3120_s14, %s3115_s6 }
  0xdc   : > { %p3118_p10 = pnand %p3116_p3, %p3926_p1  ;;  %p3124_p0 = scmp.lt.u32.totalorder %s3115_s6, %s3590_s9 }
  0xdd   : > { %p3123_p8 = por %p3122_p7, %p3121_p5 }
  0xde   : > { %p3119_p12 = pneg %p3118_p10 }
  0xdf   : > { %p3125_p6 = por %p3124_p0, %p3123_p8 }
  0xe1   : > { %p3126_p9 = pnand %p3125_p6, %p3119_p12 }
  0xe3   : > { %3129 = shalt.err (!%p3126_p9)
}
  0xe4   : > { %s3130_s13 = scalar_lea.vmem %s3593_s28, 256  ;;  %s3236_s11 = smov [#allocation2]  }
  0xe5   : > { %p3131_p11 = scmp.ne.s32.totalorder %s3593_s28, %s3130_s13  ;;  %s3135_s8 = sshll.u32 %s3236_s11, 4  ;;  %s3136_s8 = int_to_ptr.vmem [resolvable:$false] %s3135_s8 }
  0xe6   : > { %s3137_s30 = scalar_lea.vmem %s3136_s8, 512  ;;  %p3138_p4 = scmp.lt.s32.totalorder %s3593_s28, %s3136_s8 }
  0xe7   : > { %p3133_p13 = pnand %p3131_p11, %p3926_p1  ;;  %p3139_p3 = scmp.lt.s32.totalorder %s3137_s30, %s3130_s13 }
  0xe9   : > { %p3134_p2 = pneg %p3133_p13  ;;  %p3140_p10 = por %p3139_p3, %p3138_p4 }
  0xeb   : > { %p3141_p5 = pnand %p3140_p10, %p3134_p2 }
  0xed   : > { %3144 = shalt.err (!%p3141_p5)
}
  0xee   : > { %p3927_p12 = scmp.ne.s32.totalorder %s3918_s27, 0  ;;  %s561_s0 = scalar_lea.vmem [#allocation6], %s3471_s29 }
  0xef   : > { %s568_s18 = sshll.u32 %s561_s0, 4  ;;  %s3145_s6 = scalar_lea.hbm %s3599_s17, 256  ;;  %s3631_s18 = int_to_ptr.vmem [resolvable:$true] %s568_s18 }
  0xf0   : > { %2824 = dma.hbm_to_vmem [thread:$0]  (!%p3927_p12), %s3590_s9, 256, %s3593_s28, %s3603_s23, %s3922_s12, %s3922_s12, %s3921_s4  }
  0xf1   : > { %p3146_p7 = scmp.ne.s32.totalorder %s3599_s17, %s3145_s6  ;;  %s3150_s14 = scalar_lea.hbm %s3862_s3, 512 }
  0xf2   : > { %p3151_p6 = scmp.lt.u32.totalorder %s3599_s17, %s3862_s3  ;;  %p3152_p9 = scmp.lt.u32.totalorder %s3150_s14, %s3145_s6 }
  0xf3   : > { %p3148_p8 = pnand %p3146_p7, %p3926_p1  ;;  %p3154_p13 = scmp.lt.u32.totalorder %s3145_s6, %s3599_s17 }
  0xf4   : > { %p3153_p11 = por %p3152_p9, %p3151_p6 }
  0xf5   : > { %p3149_p0 = pneg %p3148_p8 }
  0xf6   : > { %p3155_p2 = por %p3154_p13, %p3153_p11 }
  0xf8   : > { %p3156_p4 = pnand %p3155_p2, %p3149_p0 }
  0xfa   : > { %3159 = shalt.err (!%p3156_p4)
}
  0xfb   : > { %s3160_s29 = scalar_lea.vmem %s3631_s18, 256  ;;  %s3237_s9 = smov [#allocation6]  }
  0xfc   : > { %p3161_p3 = scmp.ne.s32.totalorder %s3631_s18, %s3160_s29  ;;  %s3165_s28 = sshll.u32 %s3237_s9, 4  ;;  %s3166_s28 = int_to_ptr.vmem [resolvable:$false] %s3165_s28 }
  0xfd   : > { %s3167_s23 = scalar_lea.vmem %s3166_s28, 512  ;;  %p3168_p7 = scmp.lt.s32.totalorder %s3631_s18, %s3166_s28 }
  0xfe   : > { %p3163_p10 = pnand %p3161_p3, %p3926_p1  ;;  %p3169_p8 = scmp.lt.s32.totalorder %s3167_s23, %s3160_s29 }
 0x100   : > { %p3164_p5 = pneg %p3163_p10  ;;  %p3170_p6 = por %p3169_p8, %p3168_p7 }
 0x102   : > { %p3171_p9 = pnand %p3170_p6, %p3164_p5 }
 0x104   : > { %3174 = shalt.err (!%p3171_p9)
}
 0x105   : > { %2830 = dma.hbm_to_vmem [thread:$0]  (!%p3927_p12), %s3599_s17, 256, %s3631_s18, %s3492_s15, %s3922_s12, %s3922_s12, %s3921_s4  }
 0x106   : > { %p3928_p1 = scmp.ne.s32.totalorder %s3909_s25, 0 }
 0x107   : > { %s582_s21 = sand.u32 (!%p3928_p1), 1, %s3217_s19   ;;  %p3929_p0 = scmp.ne.s32.totalorder (!%p3928_p1), %s3917_s22, 0 }
 0x108   : > { %580 = sbr.rel (%p3928_p1) target bundleno = 930 (0x3a2), region = 72  ;;  %s3661_s13 = sshll.u32 (!%p3928_p1), %s582_s21, 4 }
 0x109   : > { %s583_s11 = scalar_lea.sflag (!%p3928_p1), [#allocation3], %s582_s21  ;;  %s586_s8 = scalar_lea.vmem (!%p3928_p1), [#allocation2], %s3661_s13 }
 0x10f   : > { %3192 = dma.done.wait (%p3929_p0), %s583_s11, 256  }
 0x110   : > { %3194 = vsyncadd (%p3929_p0), %s583_s11, 4294967040  ;;  %s3930_s27 = sld [smem:[#allocation21_spill]]  ;;  %s595_s25 = scalar_lea.vmem [#allocation4], %s3661_s13 }
 0x116   : > { %s591_s15 = sand.u32 1, %s3930_s27  }
 0x117   : > { %s592_s4 = scalar_lea.sflag [#allocation5], %s591_s15 }
 0x118   : > { %3196 = dma.done.wait (%p3929_p0), %s592_s4, 512  }
 0x119   : > { %3198 = vsyncadd (%p3929_p0), %s592_s4, 4294966784  ;;  %s604_s12 = scalar_lea.vmem [#allocation6], %s3661_s13  ;;  %p3931_p12 = scmp.eq.s32.totalorder %s3930_s27, 0 }
 0x11b   : > { %3200 = dma.done.wait (%p3931_p12), [#allocation8], 4096   ;;  %p3932_p11 = pmov %p3931_p12 }
 0x11d   : > { %3202 = vsyncadd (%p3932_p11), [#allocation8], 4294963200  ;;  %p3933_p13 = pmov %p3932_p11 }
 0x11e   : > { %p3934_p2 = pmov %p3932_p11 }
 0x11f   : > { %3204 = dma.done.wait (%p3933_p13), [#allocation11], 4096  }
 0x120   : > { %3206 = vsyncadd (%p3934_p2), [#allocation11], 4294963200  ;;  %p3935_p4 = pmov %p3934_p2 }
 0x121   : > { %p3936_p3 = pmov %p3934_p2 }
 0x122   : > { %3208 = dma.done.wait (%p3935_p4), [#allocation14], 32  }
 0x123   : > { %3210 = vsyncadd (%p3936_p3), [#allocation14], 4294967264  ;;  %p700_p10 = scmp.lt.s32.totalorder %s3930_s27, 1  ;;  %v826_v0 = vld [vmem:[#allocation9] sm:$0xff]  ;;  %v827_v1 = vld [vmem:[#allocation9 + $0x8] sm:$0xff]  ;;  %s3937_s0 = sld [smem:[#allocation24_spill]] }
 0x124   : > { %v828_v2 = vld [vmem:[#allocation9 + $0x10] sm:$0xff]  ;;  %v2628_v3 = vpack.c.bf16 %v827_v1, %v826_v0  ;;  %v829_v4 = vld [vmem:[#allocation9 + $0x18] sm:$0xff]  ;;  %v830_v5 = vld [vmem:[#allocation9 + $0x20] sm:$0xff]  ;;  %s3938_s16 = sld [smem:[#allocation30_spill]]  ;;  %s3238_s26 = smov 32   ;;  %vm1123_vm0 = vcmask 261120  }
 0x125   : > { %v2632_v6 = vpack.c.bf16 %v829_v4, %v828_v2  ;;  %v831_v7 = vld [vmem:[#allocation9 + $0x28] sm:$0xff]  ;;  %v728_v8 = vld [vmem:[#allocation7] sm:$0xff]  ;;  %s3952_s27 = smov (!%p700_p10, %s3930_s27), 1  ;;  %v730_v11 = vld [vmem:[#allocation7 + $0x10] sm:$0xff]  ;;  %s3239_s29 = smov 64   ;;  %vm1211_vm2 = vcmask 130048  }
 0x126   : > { %v729_v9 = vld [vmem:[#allocation7 + $0x8] sm:$0xff]  ;;  %2629 = vmatprep.subr.bf16.mxu1 %v2628_v3  ;;  %v731_v12 = vld [vmem:[#allocation7 + $0x18] sm:$0xff]  ;;  %v732_v14 = vld [vmem:[#allocation7 + $0x20] sm:$0xff]  ;;  %v2636_v15 = vpack.c.bf16 %v831_v7, %v830_v5  ;;  %s2292_s22 = sshll.u32 %s3952_s27, 4  ;;  %s3939_s23 = sld [smem:[#allocation31_spill]] }
 0x127   : > { %v2596_v10 = vpack.c.bf16 %v729_v9, %v728_v8  ;;  %2631 = vmatpush3.bf16.msra.mxu1 %v2628_v3  ;;  %v2600_v13 = vpack.c.bf16 %v731_v12, %v730_v11  ;;  %v733_v16 = vld [vmem:[#allocation7 + $0x28] sm:$0xff]  ;;  %v832_v17 = vld [vmem:[#allocation9 + $0x30] sm:$0xff]  ;;  %v833_v18 = vld [vmem:[#allocation9 + $0x38] sm:$0xff]  ;;  %s3943_s9 = sld [smem:[#allocation34_spill]]  ;;  %s3944_s21 = sld [smem:[#allocation32_spill]] }
 0x128   : > { %2633 = vmatprep.subr.bf16.mxu1 %v2632_v6  ;;  %v2604_v19 = vpack.c.bf16 %v733_v16, %v732_v14  ;;  %v734_v20 = vld [vmem:[#allocation7 + $0x30] sm:$0xff]  ;;  %v735_v21 = vld [vmem:[#allocation7 + $0x38] sm:$0xff]  ;;  %v2640_v22 = vpack.c.bf16 %v833_v18, %v832_v17  ;;  %v834_v24 = vld [vmem:[#allocation9 + $0x40] sm:$0xff]  ;;  %s3945_s17 = sld [smem:[#allocation33_spill]] }
 0x129   : > { %2597 = vmatprep.subr.bf16.mxu0 %v2596_v10  ;;  %v722_v23 = vld [vmem:[%s586_s8] sm:$0xff]  ;;  %s3699_s18 = scalar_lea.vmem %s3937_s0, %s2292_s22  ;;  %v835_v25 = vld [vmem:[#allocation9 + $0x48] sm:$0xff]  ;;  %v2608_v26 = vpack.c.bf16 %v735_v21, %v734_v20  ;;  %v837_v32 = vld [vmem:[#allocation9 + $0x58] sm:$0xff]  ;;  %s3240_s0 = smov 96  }
 0x12a   : > { %2599 = vmatpush3.bf16.msra.mxu0 %v2596_v10  ;;  %2467 = vmatprep.mubr.f32.mxu1 %v722_v23  ;;  %v736_v27 = vld [vmem:[#allocation7 + $0x40] sm:$0xff]  ;;  %v737_v28 = vld [vmem:[#allocation7 + $0x48] sm:$0xff]  ;;  %v720_v29 = vld [vmem:[%s3699_s18] sm:$0xff]  ;;  %v2644_v30 = vpack.c.bf16 %v835_v25, %v834_v24 }
 0x12b   : > { %2601 = vmatprep.subr.bf16.mxu0 %v2600_v13  ;;  %2635 = vmatpush3.bf16.msra.mxu1 %v2632_v6  ;;  %v836_v31 = vld [vmem:[#allocation9 + $0x50] sm:$0xff]  ;;  %v2612_v33 = vpack.c.bf16 %v737_v28, %v736_v27  ;;  %v739_v35 = vld [vmem:[#allocation7 + $0x58] sm:$0xff]  ;;  %v838_v37 = vld [vmem:[#allocation9 + $0x60] sm:$0xff] }
 0x12c   : > { %2637 = vmatprep.subr.bf16.mxu1 %v2636_v15  ;;  %2432 = vmatprep.mubr.f32.mxu0 %v720_v29  ;;  %v738_v34 = vld [vmem:[#allocation7 + $0x50] sm:$0xff]  ;;  %v2648_v36 = vpack.c.bf16 %v837_v32, %v836_v31  ;;  %v839_v38 = vld [vmem:[#allocation9 + $0x68] sm:$0xff]  ;;  %v2245_v39 = vld [vmem:[%s3938_s16 + $0x1] ss:$0 sm:$0xff] }
 0x12d   : > { %v2259_v40 = vld [vmem:[%s3938_s16 + $0x2] ss:$0 sm:$0xff]  ;;  %v2616_v41 = vpack.c.bf16 %v739_v35, %v738_v34  ;;  %1316 = vrot.lane.b32.xlu0 %v2245_v39, %s3238_s26  ;;  %v740_v42 = vld [vmem:[#allocation7 + $0x60] sm:$0xff]  ;;  %v741_v43 = vld [vmem:[#allocation7 + $0x68] sm:$0xff]  ;;  %v2652_v45 = vpack.c.bf16 %v839_v38, %v838_v37  ;;  %s719_s28 = scalar_lea.vmem %s3943_s9, %s2292_s22  ;;  %s2293_s22 = sshll.u32 %s3952_s27, 6 }
 0x12e   : > { %2603 = vmatpush3.bf16.msra.mxu0 %v2600_v13  ;;  %1530 = vrot.lane.b32.xlu1 %v2259_v40, %s3239_s29  ;;  %v2252_v44 = vld [vmem:[%s3939_s23 + $0x1] ss:$0 sm:$0xff]  ;;  %v2266_v46 = vld [vmem:[%s3939_s23 + $0x2] ss:$0 sm:$0xff]  ;;  %v840_v47 = vld [vmem:[#allocation9 + $0x70] sm:$0xff]  ;;  %v2620_v49 = vpack.c.bf16 %v741_v43, %v740_v42  ;;  %s709_s11 = scalar_lea.vmem %s3944_s21, %s2293_s22  ;;  %s714_s30 = scalar_lea.vmem %s3945_s17, %s2293_s22 }
 0x12f   : > { %2605 = vmatprep.subr.bf16.mxu0 %v2604_v19  ;;  %2639 = vmatpush3.bf16.msra.mxu1 %v2636_v15  ;;  %v841_v48 = vld [vmem:[#allocation9 + $0x78] sm:$0xff]  ;;  %v742_v50 = vld [vmem:[#allocation7 + $0x70] sm:$0xff]  ;;  %v1022_v55 = vld [vmem:[#allocation12] sm:$0xff] }
 0x130   : > { %2641 = vmatprep.subr.bf16.mxu1 %v2640_v22  ;;  %v743_v51 = vld [vmem:[#allocation7 + $0x78] sm:$0xff]  ;;  %v2656_v53 = vpack.c.bf16 %v841_v48, %v840_v47  ;;  %v1023_v56 = vld [vmem:[#allocation12 + $0x8] sm:$0xff]  ;;  %v924_v58 = vld [vmem:[#allocation10] sm:$0xff] }
 0x131   : > { %1422 = vrot.lane.b32.xlu0 %v2252_v44, %s3238_s26  ;;  %v2273_v52 = vld [vmem:[%s3938_s16 + $0x3] ss:$0 sm:$0xff]  ;;  %v2624_v57 = vpack.c.bf16 %v743_v51, %v742_v50  ;;  %v925_v59 = vld [vmem:[#allocation10 + $0x8] sm:$0xff]  ;;  %v2692_v60 = vpack.c.bf16 %v1023_v56, %v1022_v55  ;;  %v1024_v61 = vld [vmem:[#allocation12 + $0x10] sm:$0xff] }
 0x132   : > { %2607 = vmatpush3.bf16.msra.mxu0 %v2604_v19  ;;  %1636 = vrot.lane.b32.xlu1 %v2266_v46, %s3239_s29  ;;  %v2280_v54 = vld [vmem:[%s3939_s23 + $0x3] ss:$0 sm:$0xff]  ;;  %v2660_v63 = vpack.c.bf16 %v925_v59, %v924_v58  ;;  %v926_v1 = vld [vmem:[#allocation10 + $0x10] sm:$0xff]  ;;  %v1026_v5 = vld [vmem:[#allocation12 + $0x20] sm:$0xff] }
 0x133   : > { %2609 = vmatprep.subr.bf16.mxu0 %v2608_v26  ;;  %2643 = vmatpush3.bf16.msra.mxu1 %v2640_v22  ;;  %v1025_v62 = vld [vmem:[#allocation12 + $0x18] sm:$0xff]  ;;  %v726_v4 = vld [vmem:[%s604_s12] sm:$0xff]  ;;  %v1027_v6 = vld [vmem:[#allocation12 + $0x28] sm:$0xff] }
 0x134   : > { %2645 = vmatprep.subr.bf16.mxu1 %v2644_v30  ;;  %v723_v0 = vld [vmem:[%s586_s8 + $0x8] sm:$0xff]  ;;  %v2696_v3 = vpack.c.bf16 %v1025_v62, %v1024_v61  ;;  %v721_v7 = vld [vmem:[%s3699_s18 + $0x8] sm:$0xff]  ;;  %v2700_v11 = vpack.c.bf16 %v1027_v6, %v1026_v5  ;;  %v1028_v12 = vld [vmem:[#allocation12 + $0x30] sm:$0xff]  ;;  %s3942_s18 = sld [smem:[#allocation28_spill]] }
 0x135   : > { %1744 = vrot.lane.b32.xlu0 %v2273_v52, %s3240_s0  ;;  %v927_v2 = vld [vmem:[#allocation10 + $0x18] sm:$0xff]  ;;  %v928_v9 = vld [vmem:[#allocation10 + $0x20] sm:$0xff]  ;;  %v929_v10 = vld [vmem:[#allocation10 + $0x28] sm:$0xff] }
 0x136   : > { %2611 = vmatpush3.bf16.msra.mxu0 %v2608_v26  ;;  %1850 = vrot.lane.b32.xlu1 %v2280_v54, %s3240_s0  ;;  %v2664_v8 = vpack.c.bf16 %v927_v2, %v926_v1  ;;  %v1029_v13 = vld [vmem:[#allocation12 + $0x38] sm:$0xff]  ;;  %v2668_v14 = vpack.c.bf16 %v929_v10, %v928_v9  ;;  %v930_v15 = vld [vmem:[#allocation10 + $0x30] sm:$0xff]  ;;  %v1030_v18 = vld [vmem:[#allocation12 + $0x40] sm:$0xff] }
 0x137   : > { %2613 = vmatprep.subr.bf16.mxu0 %v2612_v33  ;;  %2647 = vmatpush3.bf16.msra.mxu1 %v2644_v30  ;;  %v931_v16 = vld [vmem:[#allocation10 + $0x38] sm:$0xff]  ;;  %v2704_v17 = vpack.c.bf16 %v1029_v13, %v1028_v12  ;;  %v1031_v19 = vld [vmem:[#allocation12 + $0x48] sm:$0xff]  ;;  %v932_v21 = vld [vmem:[#allocation10 + $0x40] sm:$0xff] }
 0x138   : > { %2649 = vmatprep.subr.bf16.mxu1 %v2648_v36  ;;  %v2672_v20 = vpack.c.bf16 %v931_v16, %v930_v15  ;;  %v933_v22 = vld [vmem:[#allocation10 + $0x48] sm:$0xff]  ;;  %v2708_v23 = vpack.c.bf16 %v1031_v19, %v1030_v18  ;;  %v1032_v24 = vld [vmem:[#allocation12 + $0x50] sm:$0xff]  ;;  %v1033_v25 = vld [vmem:[#allocation12 + $0x58] sm:$0xff] }
 0x139   : > { %v2676_v26 = vpack.c.bf16 %v933_v22, %v932_v21  ;;  %v934_v27 = vld [vmem:[#allocation10 + $0x50] sm:$0xff]  ;;  %v935_v28 = vld [vmem:[#allocation10 + $0x58] sm:$0xff]  ;;  %v2712_v29 = vpack.c.bf16 %v1033_v25, %v1032_v24  ;;  %v1034_v30 = vld [vmem:[#allocation12 + $0x60] sm:$0xff] }
 0x13a   : > { %2615 = vmatpush3.bf16.msra.mxu0 %v2612_v33  ;;  %v1035_v31 = vld [vmem:[#allocation12 + $0x68] sm:$0xff]  ;;  %v2680_v32 = vpack.c.bf16 %v935_v28, %v934_v27  ;;  %v936_v33 = vld [vmem:[#allocation10 + $0x60] sm:$0xff]  ;;  %v1037_v37 = vld [vmem:[#allocation12 + $0x78] sm:$0xff] }
 0x13b   : > { %2617 = vmatprep.subr.bf16.mxu0 %v2616_v41  ;;  %2651 = vmatpush3.bf16.msra.mxu1 %v2648_v36  ;;  %v937_v34 = vld [vmem:[#allocation10 + $0x68] sm:$0xff]  ;;  %v2716_v35 = vpack.c.bf16 %v1035_v31, %v1034_v30  ;;  %v1036_v36 = vld [vmem:[#allocation12 + $0x70] sm:$0xff]  ;;  %v939_v40 = vld [vmem:[#allocation10 + $0x78] sm:$0xff] }
 0x13c   : > { %2653 = vmatprep.subr.bf16.mxu1 %v2652_v45  ;;  %v2684_v38 = vpack.c.bf16 %v937_v34, %v936_v33  ;;  %v938_v39 = vld [vmem:[#allocation10 + $0x70] sm:$0xff]  ;;  %v727_v43 = vld [vmem:[%s604_s12 + $0x8] sm:$0xff]  ;;  %v2233_v46 = vld [vmem:[#allocation13] ss:$0 sm:$0xff] }
 0x13d   : > { %v2688_v42 = vpack.c.bf16 %v939_v40, %v938_v39  ;;  %v724_v44 = vld [vmem:[%s595_s25] sm:$0xff]  ;;  %vm3739_vm1 = vmpackc.low %vm1123_vm0, %vm1123_vm0  ;;  %v2232_v54 = vld [vmem:[%s3942_s18] ss:$0 sm:$0xff] }
 0x13e   : > { %2619 = vmatpush3.bf16.msra.mxu0 %v2616_v41  ;;  %v2720_v41 = vpack.c.bf16 %v1037_v37, %v1036_v36  ;;  %v2235_v59 = vld [vmem:[%s3938_s16] ss:$0 sm:$0xff] }
 0x13f   : > { %2621 = vmatprep.subr.bf16.mxu0 %v2620_v49  ;;  %2655 = vmatpush3.bf16.msra.mxu1 %v2652_v45  ;;  %v725_v45 = vld [vmem:[%s595_s25 + $0x8] sm:$0xff] }
 0x140   : > { %2657 = vmatprep.subr.bf16.mxu1 %v2656_v53  ;;  %v2240_v62 = vld [vmem:[%s3939_s23] ss:$0 sm:$0xff] }
 0x142   : > { %2623 = vmatpush3.bf16.msra.mxu0 %v2620_v49 }
 0x143   : > { %2625 = vmatprep.subr.bf16.mxu0 %v2624_v57  ;;  %2659 = vmatpush3.bf16.msra.mxu1 %v2656_v53 }
 0x144   : > { %2693 = vmatprep.subr.bf16.mxu1 %v2692_v60 }
 0x146   : > { %2627 = vmatpush3.bf16.msra.mxu0 %v2624_v57  ;;  %2468 = vmatmul.mubr.f32.vlgmr.msra.gmra.mrb[0].mxu1 %v723_v0 }
 0x147   : > { %2661 = vmatprep.subr.bf16.mxu0 %v2660_v63  ;;  %2695 = vmatpush3.bf16.msra.mxu1 %v2692_v60 }
 0x148   : > { %2537 = vmatprep.mubr.f32.mxu1 %v726_v4  ;;  %2697 = vmatprep.subr.bf16.mxu1 %v2696_v3 }
 0x149   : > { %2433 = vmatmul.mubr.f32.vlgmr.msra.gmra.mrb[0].mxu0 %v721_v7 }
 0x14a   : > { %2663 = vmatpush3.bf16.msra.mxu0 %v2660_v63  ;;  %2502 = vmatprep.mubr.f32.mxu0 %v724_v44 }
 0x14b   : > { %2665 = vmatprep.subr.bf16.mxu0 %v2664_v8  ;;  %2699 = vmatpush3.bf16.msra.mxu1 %v2696_v3 }
 0x14c   : > { %2701 = vmatprep.subr.bf16.mxu1 %v2700_v11 }
 0x14e   : > { %2667 = vmatpush3.bf16.msra.mxu0 %v2664_v8 }
 0x14f   : > { %2669 = vmatprep.subr.bf16.mxu0 %v2668_v14  ;;  %2703 = vmatpush3.bf16.msra.mxu1 %v2700_v11 }
 0x150   : > { %2705 = vmatprep.subr.bf16.mxu1 %v2704_v17 }
 0x152   : > { %2671 = vmatpush3.bf16.msra.mxu0 %v2668_v14 }
 0x153   : > { %2673 = vmatprep.subr.bf16.mxu0 %v2672_v20  ;;  %2707 = vmatpush3.bf16.msra.mxu1 %v2704_v17 }
 0x154   : > { %2709 = vmatprep.subr.bf16.mxu1 %v2708_v23 }
 0x156   : > { %2675 = vmatpush3.bf16.msra.mxu0 %v2672_v20 }
 0x157   : > { %2677 = vmatprep.subr.bf16.mxu0 %v2676_v26  ;;  %2711 = vmatpush3.bf16.msra.mxu1 %v2708_v23  ;;  %v2234_v23 = vld [vmem:[#allocation15] ss:$0 sm:$0xff] }
 0x158   : > { %2713 = vmatprep.subr.bf16.mxu1 %v2712_v29 }
 0x15a   : > { %2679 = vmatpush3.bf16.msra.mxu0 %v2676_v26 }
 0x15b   : > { %2681 = vmatprep.subr.bf16.mxu0 %v2680_v32  ;;  %2715 = vmatpush3.bf16.msra.mxu1 %v2712_v29 }
 0x15c   : > { %2717 = vmatprep.subr.bf16.mxu1 %v2716_v35 }
 0x15e   : > { %2683 = vmatpush3.bf16.msra.mxu0 %v2680_v32 }
 0x15f   : > { %2685 = vmatprep.subr.bf16.mxu0 %v2684_v38  ;;  %2719 = vmatpush3.bf16.msra.mxu1 %v2716_v35 }
 0x160   : > { %2721 = vmatprep.subr.bf16.mxu1 %v2720_v41 }
 0x162   : > { %2687 = vmatpush3.bf16.msra.mxu0 %v2684_v38 }
 0x163   : > { %2689 = vmatprep.subr.bf16.mxu0 %v2688_v42  ;;  %2723 = vmatpush3.bf16.msra.mxu1 %v2720_v41 }
 0x166   : > { %2691 = vmatpush3.bf16.msra.mxu0 %v2688_v42  ;;  %2538 = vmatmul.mubr.f32.vlgmr.msra.gmra.mrb[2].mxu1 %v727_v43 }
 0x169   : > { %2503 = vmatmul.mubr.f32.vlgmr.msra.gmra.mrb[2].mxu0 %v725_v45 }
 0x19f   : > { %v1317_v52 = vpop.permute.xlu0 %1316 }
 0x1a0   : > { %v1531_v5 = vpop.permute.xlu1 %1530 }
 0x1a3   : > { %v1423_v61 = vpop.permute.xlu0 %1422 }
 0x1a4   : > { %v1637_v17 = vpop.permute.xlu1 %1636 }
 0x1a7   : > { %v1745_v8 = vpop.permute.xlu0 %1744 }
 0x1a8   : > { %v1851_v20 = vpop.permute.xlu1 %1850 }
 0x219   : > { %v2469_v47 = vpop.f32.mrb[0].mxu1 }
 0x21a   : > { %v921_v48 = vadd.f32 %v2469_v47, %v2233_v46  ;;  %v915_v49 = vpop.f32.mrb[1].mxu1 }
 0x21b   : > { %v916_v50 = vadd.f32 %v2233_v46, %v915_v49 }
 0x21c   : > { %v2434_v51 = vpop.f32.mrb[0].mxu0 }
 0x21d   : > { %v817_v55 = vpop.f32.mrb[1].mxu0  ;;  %v2887_v56 = vpack.i.bf16 %v921_v48, %v916_v50  ;;  %v2724_v57 = vpack.c.bf16 %v921_v48, %v916_v50  ;;  %v823_v60 = vadd.f32 %v2434_v51, %v2232_v54 }
 0x21e   : > { %v818_v58 = vadd.f32 %v2232_v54, %v817_v55 }
 0x21f   : > { %2888 = vrot.lane.b32.xlu0 %v2887_v56, %s3240_s0  ;;  %2726 = vmatprep.subr.msk.bf16.mxu0 %vm3739_vm1, %v2724_v57  ;;  %v1320_v2 = vadd.f32 %v1317_v52, %v823_v60  ;;  %v1122_v3 = vadd.f32 %v2235_v59, %v823_v60  ;;  %v1534_v7 = vadd.f32 %v1531_v5, %v823_v60 }
 0x220   : > { %2729 = vmatpush3.bf16.xpose.msk.msra.mxu0 %vm3739_vm1, %v2724_v57  ;;  %v1425_v63 = vadd.f32 %v1423_v61, %v818_v58  ;;  %v1121_v0 = vadd.f32 %v2235_v59, %v818_v58  ;;  %v1218_v1 = vadd.f32 %v2240_v62, %v818_v58  ;;  %v1319_v4 = vadd.f32 %v1317_v52, %v818_v58 }
 0x221   : > { %v1533_v6 = vadd.f32 %v1531_v5, %v818_v58  ;;  %v1747_v9 = vadd.f32 %v1745_v8, %v818_v58  ;;  %v1748_v14 = vadd.f32 %v1745_v8, %v823_v60  ;;  %v1426_v15 = vadd.f32 %v1423_v61, %v823_v60 }
 0x222   : > { %1429 = vrot.lane.b32.xlu1 %v1425_v63, %s3240_s0  ;;  %2544 = vmatprep.mubr.msk.f32.mxu0 %vm1123_vm0, %v1121_v0  ;;  %v1219_v16 = vadd.f32 %v2240_v62, %v823_v60  ;;  %v1639_v18 = vadd.f32 %v1637_v17, %v818_v58  ;;  %v1640_v19 = vadd.f32 %v1637_v17, %v823_v60 }
 0x223   : > { %2893 = vrot.lane.b32.xlu0 %v2887_v56, %s3239_s29  ;;  %2551 = vmatprep.mubr.msk.f32.mxu1 %vm1123_vm0, %v1218_v1  ;;  %v1853_v21 = vadd.f32 %v1851_v20, %v818_v58  ;;  %v1854_v22 = vadd.f32 %v1851_v20, %v823_v60 }
 0x227   : > { %1325 = vrot.lane.b32.xlu0 %v1320_v2, %s3240_s0  ;;  %2545 = vmatmul.mubr.msk.f32.vlgmr.msra.gmra.mrb[4].mxu0 %vm1123_vm0, %v1122_v3 }
 0x22b   : > { %1323 = vrot.lane.b32.xlu0 %v1319_v4, %s3240_s0 }
 0x22f   : > { %2903 = vrot.lane.b32.xlu0 %v2887_v56, %s3238_s26 }
 0x233   : > { %1537 = vrot.lane.b32.xlu0 %v1533_v6, %s3239_s29 }
 0x237   : > { %1539 = vrot.lane.b32.xlu0 %v1534_v7, %s3239_s29 }
 0x239   : > { %v2539_v10 = vpop.f32.mrb[2].mxu1 }
 0x23a   : > { %v1104_v11 = vpop.f32.mrb[3].mxu1 }
 0x23b   : > { %v2730_v12 = vpack.c.bf16 %v2539_v10, %v1104_v11  ;;  %1751 = vrot.lane.b32.xlu0 %v1747_v9, %s3238_s26  ;;  %v2897_v13 = vpack.i.bf16 %v2539_v10, %v1104_v11 }
 0x23c   : > { %v2504_v24 = vpop.f32.mrb[2].mxu0 }
 0x23d   : > { %2732 = vmatprep.subr.msk.bf16.mxu1 %vm3739_vm1, %v2730_v12  ;;  %2898 = vrot.lane.b32.xlu1 %v2897_v13, %s3240_s0  ;;  %v1019_v25 = vadd.f32 %v2504_v24, %v2234_v23  ;;  %v1013_v26 = vpop.f32.mrb[3].mxu0 }
 0x23e   : > { %2735 = vmatpush3.bf16.xpose.msk.msra.mxu1 %vm3739_vm1, %v2730_v12  ;;  %v1014_v27 = vadd.f32 %v2234_v23, %v1013_v26 }
 0x23f   : > { %1753 = vrot.lane.b32.xlu0 %v1748_v14, %s3238_s26  ;;  %1114 = vst [vmem:[%s719_s28 + $0x8] sm:$0xff] %v1019_v25 }
 0x240   : > { %1113 = vst [vmem:[%s719_s28] sm:$0xff] %v1014_v27 }
 0x241   : > { %1431 = vrot.lane.b32.xlu1 %v1426_v15, %s3240_s0 }
 0x245   : > { %2908 = vrot.lane.b32.xlu1 %v2897_v13, %s3239_s29  ;;  %2552 = vmatmul.mubr.msk.f32.vlgmr.msra.gmra.mrb[4].mxu1 %vm1123_vm0, %v1219_v16 }
 0x249   : > { %1643 = vrot.lane.b32.xlu1 %v1639_v18, %s3239_s29 }
 0x24d   : > { %2913 = vrot.lane.b32.xlu1 %v2897_v13, %s3238_s26 }
 0x251   : > { %1645 = vrot.lane.b32.xlu1 %v1640_v19, %s3239_s29 }
 0x255   : > { %1857 = vrot.lane.b32.xlu1 %v1853_v21, %s3238_s26 }
 0x259   : > { %1859 = vrot.lane.b32.xlu1 %v1854_v22, %s3238_s26 }
 0x291   : > { %v2889_v28 = vpop.permute.xlu0 %2888 }
 0x292   : > { %v2891_v29 = vunpack.i.h.bf16 %v2889_v28  ;;  %v2890_v30 = vunpack.i.l.bf16 %v2889_v28 }
 0x294   : > { %v2736_v31 = vpack.c.bf16 %v2891_v29, %v2890_v30  ;;  %v1430_v32 = vpop.permute.xlu1 %1429 }
 0x295   : > { %v2894_v33 = vpop.permute.xlu0 %2893  ;;  %2565 = vmatprep.mubr.msk.f32.mxu1 %vm1123_vm0, %v1430_v32 }
 0x296   : > { %v2896_v34 = vunpack.i.h.bf16 %v2894_v33  ;;  %v2895_v35 = vunpack.i.l.bf16 %v2894_v33  ;;  %2738 = vmatprep.subr.msk.bf16.mxu0 %vm3739_vm1, %v2736_v31 }
 0x297   : > { %2741 = vmatpush3.bf16.xpose.msk.msra.mxu0 %vm3739_vm1, %v2736_v31 }
 0x298   : > { %v2748_v36 = vpack.c.bf16 %v2896_v34, %v2895_v35 }
 0x299   : > { %v1326_v37 = vpop.permute.xlu0 %1325 }
 0x29a   : > { %2750 = vmatprep.subr.msk.bf16.mxu0 %vm3739_vm1, %v2748_v36 }
 0x29d   : > { %v1324_v38 = vpop.permute.xlu0 %1323 }
 0x29e   : > { %2558 = vmatprep.mubr.msk.f32.mxu0 %vm1123_vm0, %v1324_v38 }
 0x29f   : > { %2559 = vmatmul.mubr.msk.f32.vlgmr.msra.gmra.mrb[6].mxu0 %vm1123_vm0, %v1326_v37 }
 0x2a0   : > { %2753 = vmatpush3.bf16.xpose.msk.msra.mxu0 %vm3739_vm1, %v2748_v36 }
 0x2a1   : > { %v2904_v39 = vpop.permute.xlu0 %2903 }
 0x2a2   : > { %v2906_v40 = vunpack.i.h.bf16 %v2904_v39  ;;  %v2905_v41 = vunpack.i.l.bf16 %v2904_v39 }
 0x2a4   : > { %v2760_v42 = vpack.c.bf16 %v2906_v40, %v2905_v41 }
 0x2a5   : > { %v1538_v43 = vpop.permute.xlu0 %1537 }
 0x2a6   : > { %2762 = vmatprep.subr.msk.bf16.mxu0 %vm3739_vm1, %v2760_v42  ;;  %2572 = vmatprep.mubr.msk.f32.mxu0 %vm1123_vm0, %v1538_v43 }
 0x2a9   : > { %v1540_v44 = vpop.permute.xlu0 %1539 }
 0x2aa   : > { %2573 = vmatmul.mubr.msk.f32.vlgmr.msra.gmra.mrb[8].mxu0 %vm1123_vm0, %v1540_v44 }
 0x2ab   : > { %2765 = vmatpush3.bf16.xpose.msk.msra.mxu0 %vm3739_vm1, %v2760_v42 }
 0x2ad   : > { %v1752_v45 = vpop.permute.xlu0 %1751 }
 0x2ae   : > { %2586 = vmatprep.mubr.msk.f32.mxu0 %vm1123_vm0, %v1752_v45 }
 0x2af   : > { %v2899_v46 = vpop.permute.xlu1 %2898 }
 0x2b0   : > { %v2901_v47 = vunpack.i.h.bf16 %v2899_v46  ;;  %v2900_v48 = vunpack.i.l.bf16 %v2899_v46 }
 0x2b1   : > { %v1754_v49 = vpop.permute.xlu0 %1753 }
 0x2b2   : > { %v2742_v50 = vpack.c.bf16 %v2901_v47, %v2900_v48  ;;  %2587 = vmatmul.mubr.msk.f32.vlgmr.msra.gmra.mrb[10].mxu0 %vm1123_vm0, %v1754_v49 }
 0x2b3   : > { %v1432_v51 = vpop.permute.xlu1 %1431 }
 0x2b4   : > { %2744 = vmatprep.subr.msk.bf16.mxu1 %vm3739_vm1, %v2742_v50 }
 0x2b5   : > { %2747 = vmatpush3.bf16.xpose.msk.msra.mxu1 %vm3739_vm1, %v2742_v50 }
 0x2b7   : > { %v2909_v52 = vpop.permute.xlu1 %2908 }
 0x2b8   : > { %v2911_v54 = vunpack.i.h.bf16 %v2909_v52  ;;  %v2910_v55 = vunpack.i.l.bf16 %v2909_v52 }
 0x2ba   : > { %v2754_v56 = vpack.c.bf16 %v2911_v54, %v2910_v55 }
 0x2bb   : > { %v1644_v57 = vpop.permute.xlu1 %1643 }
 0x2bc   : > { %2566 = vmatmul.mubr.msk.f32.vlgmr.msra.gmra.mrb[6].mxu1 %vm1123_vm0, %v1432_v51  ;;  %2756 = vmatprep.subr.msk.bf16.mxu1 %vm3739_vm1, %v2754_v56 }
 0x2bd   : > { %2759 = vmatpush3.bf16.xpose.msk.msra.mxu1 %vm3739_vm1, %v2754_v56  ;;  %2579 = vmatprep.mubr.msk.f32.mxu1 %vm1123_vm0, %v1644_v57 }
 0x2bf   : > { %v2914_v58 = vpop.permute.xlu1 %2913 }
 0x2c0   : > { %v2916_v59 = vunpack.i.h.bf16 %v2914_v58  ;;  %v2915_v60 = vunpack.i.l.bf16 %v2914_v58 }
 0x2c2   : > { %v2766_v61 = vpack.c.bf16 %v2916_v59, %v2915_v60 }
 0x2c3   : > { %v1646_v62 = vpop.permute.xlu1 %1645 }
 0x2c4   : > { %2580 = vmatmul.mubr.msk.f32.vlgmr.msra.gmra.mrb[8].mxu1 %vm1123_vm0, %v1646_v62  ;;  %2768 = vmatprep.subr.msk.bf16.mxu1 %vm3739_vm1, %v2766_v61 }
 0x2c5   : > { %2771 = vmatpush3.bf16.xpose.msk.msra.mxu1 %vm3739_vm1, %v2766_v61 }
 0x2c7   : > { %v1858_v63 = vpop.permute.xlu1 %1857 }
 0x2c8   : > { %2593 = vmatprep.mubr.msk.f32.mxu1 %vm1123_vm0, %v1858_v63 }
 0x2cb   : > { %v1860_v0 = vpop.permute.xlu1 %1859 }
 0x2cc   : > { %2594 = vmatmul.mubr.msk.f32.vlgmr.msra.gmra.mrb[10].mxu1 %vm1123_vm0, %v1860_v0 }
 0x2fa   : > { %v2546_v1 = vpop.f32.mrb[4].mxu0 }
 0x2fb   : > { %1213 = vst.msk [vmem:[%s709_s11 + $0x8] sm:$0xff] %vm1211_vm2, %v2546_v1  ;;  %v1202_v2 = vpop.f32.mrb[5].mxu0 }
 0x2fc   : > { %1212 = vst.msk [vmem:[%s709_s11] sm:$0xff] %vm1211_vm2, %v1202_v2 }
 0x318   : > { %v2553_v53 = vpop.f32.mrb[4].mxu1 }
 0x319   : > { %1308 = vst.msk [vmem:[%s714_s30 + $0x8] sm:$0xff] %vm1211_vm2, %v2553_v53  ;;  %v1298_v3 = vpop.f32.mrb[5].mxu1 }
 0x31a   : > { %1307 = vst.msk [vmem:[%s714_s30] sm:$0xff] %vm1211_vm2, %v1298_v3 }
 0x372   : > { %v2560_v4 = vpop.f32.mrb[6].mxu0 }
 0x373   : > { %2251 = vst.msk [vmem:[%s709_s11 + $0x18] sm:$0xff] %vm1211_vm2, %v2560_v4  ;;  %v1405_v5 = vpop.f32.mrb[7].mxu0 }
 0x374   : > { %2250 = vst.msk [vmem:[%s709_s11 + $0x10] sm:$0xff] %vm1211_vm2, %v1405_v5 }
 0x37d   : > { %v2574_v6 = vpop.f32.mrb[8].mxu0 }
 0x37e   : > { %2265 = vst.msk [vmem:[%s709_s11 + $0x28] sm:$0xff] %vm1211_vm2, %v2574_v6  ;;  %v1619_v7 = vpop.f32.mrb[9].mxu0 }
 0x37f   : > { %2264 = vst.msk [vmem:[%s709_s11 + $0x20] sm:$0xff] %vm1211_vm2, %v1619_v7 }
 0x385   : > { %v2588_v8 = vpop.f32.mrb[10].mxu0 }
 0x386   : > { %2279 = vst.msk [vmem:[%s709_s11 + $0x38] sm:$0xff] %vm1211_vm2, %v2588_v8  ;;  %v1833_v9 = vpop.f32.mrb[11].mxu0 }
 0x387   : > { %2278 = vst.msk [vmem:[%s709_s11 + $0x30] sm:$0xff] %vm1211_vm2, %v1833_v9 }
 0x38f   : > { %v2567_v10 = vpop.f32.mrb[6].mxu1 }
 0x390   : > { %2258 = vst.msk [vmem:[%s714_s30 + $0x18] sm:$0xff] %vm1211_vm2, %v2567_v10  ;;  %v1511_v11 = vpop.f32.mrb[7].mxu1 }
 0x391   : > { %2257 = vst.msk [vmem:[%s714_s30 + $0x10] sm:$0xff] %vm1211_vm2, %v1511_v11 }
 0x397   : > { %v2581_v12 = vpop.f32.mrb[8].mxu1 }
 0x398   : > { %2272 = vst.msk [vmem:[%s714_s30 + $0x28] sm:$0xff] %vm1211_vm2, %v2581_v12  ;;  %v1725_v13 = vpop.f32.mrb[9].mxu1 }
 0x399   : > { %2271 = vst.msk [vmem:[%s714_s30 + $0x20] sm:$0xff] %vm1211_vm2, %v1725_v13 }
 0x39f   : > { %v2595_v14 = vpop.f32.mrb[10].mxu1 }
 0x3a0   : > { %2286 = vst.msk [vmem:[%s714_s30 + $0x38] sm:$0xff] %vm1211_vm2, %v2595_v14  ;;  %v1939_v15 = vpop.f32.mrb[11].mxu1 }
 0x3a1   : > { %2285 = vst.msk [vmem:[%s714_s30 + $0x30] sm:$0xff] %vm1211_vm2, %v1939_v15 }
 0x3a2 PF: > { %s3946_s21 = sld [smem:[#allocation22_spill]]  ;;  %s3947_s27 = sld [smem:[#allocation23_spill]] }
 0x3a3   : > { %s3948_s18 = smov %s3217_s19  ;;  %s3949_s19 = smov %s3221_s20 }
 0x3a8   : > { %p32_p5 = scmp.ge.s32.totalorder %s3946_s21, 4   ;;  %s3950_s20 = smov %s3947_s27 }
 0x3aa   :  { %34 = sbr.rel (!%p32_p5) target bundleno = 20 (0x14), region = 193 }
 0x3b1   :  { %2004 = vsyncpa [#allocation3], 1 }
 0x3b2   :  { %2006 = vsyncpa [#allocation3 + $0x1], 1 }
 0x3b3   :  { %2007 = vsyncpa [#allocation5], 1 }
 0x3b4   :  { %2009 = vsyncpa [#allocation5 + $0x1], 1 }
 0x3b5   :  { %2010 = vsyncpa [#allocation8], 1 }
 0x3b6   :  { %2011 = vsyncpa [#allocation11], 1 }
 0x3b7   :  { %2012 = vsyncpa [#allocation14], 1 }

</bundles_post_ra>
